<compile_context>
chip_gen: v7x
topology: tpu7x:2x2x1
jax: 0.10.0
libtpu: 0.0.40
codegen_flags: <defaults>
</compile_context>

<pallas_src>
import functools
import math

import numpy as np

import jax
import jax.numpy as jnp
from jax import lax
from jax.experimental import pallas as pl
from jax.experimental.pallas import tpu as pltpu


_BN_EPS = 1e-5
OUT_PAD = 128  # lane-dense packed output width: [logits | bbox | iou | zeros]


# -----------------------------------------------------------------------------
# Fused per-level FCOS head kernel
# -----------------------------------------------------------------------------
def _fcos_head_kernel(*refs, conv_layers):
    it = iter(refs)
    x_ref = next(it)                                            # (T, C)
    cls_params = [(next(it), next(it)) for _ in range(conv_layers)]
    box_params = [(next(it), next(it)) for _ in range(conv_layers)]
    lg_w, lg_b = next(it), next(it)                             # (3C, 128), (1, 128)
    bp_w, bp_b, bp_mask = next(it), next(it), next(it)          # Scale folded in
    mx_wa, mx_wb, mx_b = next(it), next(it), next(it)           # mix_fc split halves
    ic_w, ic_b = next(it), next(it)
    io_w, io_b = next(it), next(it)
    o_ref = next(it)                                            # (T, 128)

    x = x_ref[...]
    T = x.shape[0]

    # Boundary masks: hoisted ONCE, reused by every k=3 conv (Cout-independent).
    t_idx = lax.broadcasted_iota(jnp.int32, (T, 1), 0)
    not_first = (t_idx > 0).astype(jnp.float32)                 # zero at row 0
    not_last = (t_idx < T - 1).astype(jnp.float32)              # zero at row T-1

    def conv3(v, w_ref, b_ref, relu=False):
        # row t <- v[t-1] (zero-padded) / v[t+1] (zero-padded); shifts are
        # masked on the *input* so the single dot sees clean boundaries.
        prev = pltpu.roll(v, shift=1, axis=0) * not_first
        nxt = pltpu.roll(v, shift=T - 1, axis=0) * not_last     # == shift -1, non-neg
        xs = jnp.concatenate([prev, v, nxt], axis=-1)           # (T, 3*Cin)
        y = jnp.dot(xs, w_ref[...], preferred_element_type=jnp.float32) + b_ref[...]
        return jnp.maximum(y, 0.0) if relu else y

    def conv1(v, w_ref, b_ref, relu=False):
        y = jnp.dot(v, w_ref[...], preferred_element_type=jnp.float32) + b_ref[...]
        return jnp.maximum(y, 0.0) if relu else y

    cls_t = x
    box_t = x
    for w_ref, b_ref in cls_params:                             # Conv+BN+ReLU folded
        cls_t = conv3(cls_t, w_ref, b_ref, relu=True)
    for w_ref, b_ref in box_params:
        box_t = conv3(box_t, w_ref, b_ref, relu=True)

    # Heads, written at disjoint lane offsets of the packed 128-wide output.
    y_cls = conv3(cls_t, lg_w, lg_b)                            # cols [0:nc]
    y_box = jnp.exp(conv3(box_t, bp_w, bp_b)) * bp_mask[...]    # cols [nc:nc+2]

    # mix_fc: k=1 conv on concat([cls_t, box_t]) == two dots summed (no concat).
    mix = jnp.dot(cls_t, mx_wa[...], preferred_element_type=jnp.float32)
    mix = mix + jnp.dot(box_t, mx_wb[...], preferred_element_type=jnp.float32)
    mix = jnp.maximum(mix + mx_b[...], 0.0)

    iou_h = conv3(mix, ic_w, ic_b, relu=True)
    y_iou = conv1(iou_h, io_w, io_b)                            # col [nc+2]

    o_ref[...] = y_cls + y_box + y_iou                          # one lane-dense store


def fcos_head_level_pallas(feat_ntc, level_args, conv_layers):
    """feat_ntc: (N, T, C) f32 -> packed (N, T, OUT_PAD) f32."""
    N, T, C = feat_ntc.shape
    kern = functools.partial(_fcos_head_kernel, conv_layers=conv_layers)

    def full_spec(a):
        return pl.BlockSpec(a.shape, lambda n: (0,) * a.ndim)

    in_specs = [pl.BlockSpec((None, T, C), lambda n: (n, 0, 0))]
    in_specs += [full_spec(a) for a in level_args]

    return pl.pallas_call(
        kern,
        out_shape=jax.ShapeDtypeStruct((N, T, OUT_PAD), jnp.float32),
        grid=(N,),
        in_specs=in_specs,
        out_specs=pl.BlockSpec((None, T, OUT_PAD), lambda n: (n, 0, 0)),
        compiler_params=pltpu.CompilerParams(
            dimension_semantics=("parallel",)),
    )(feat_ntc, *level_args)


# -----------------------------------------------------------------------------
# Raw parameters (mirror FCOSHead.__init__, eval-mode BN)
# -----------------------------------------------------------------------------
def _conv_init(key, cout, cin, k):
    return {"w": 0.01 * jax.random.normal(key, (cout, cin, k), dtype=jnp.float32),
            "b": jnp.zeros((cout,), jnp.float32)}


def _bn_init(c):
    return {"gamma": jnp.ones((c,), jnp.float32), "beta": jnp.zeros((c,), jnp.float32),
            "mean": jnp.zeros((c,), jnp.float32), "var": jnp.ones((c,), jnp.float32)}


def init_fcos_params(key, C, num_classes, conv_layers, prior_prob):
    n_convs = 2 * conv_layers + 5
    keys = jax.random.split(key, n_convs)
    ki = iter(range(n_convs))
    p = {"cls_tower": [], "bbox_tower": []}
    for _ in range(conv_layers):
        p["cls_tower"].append({"conv": _conv_init(keys[next(ki)], C, C, 3), "bn": _bn_init(C)})
        p["bbox_tower"].append({"conv": _conv_init(keys[next(ki)], C, C, 3), "bn": _bn_init(C)})
    p["cls_logits"] = _conv_init(keys[next(ki)], num_classes, C, 3)
    p["cls_logits"]["b"] = jnp.full((num_classes,),
                                    -math.log((1 - prior_prob) / prior_prob), jnp.float32)
    p["bbox_pred"] = _conv_init(keys[next(ki)], 2, C, 3)
    p["mix_fc"] = {"conv": _conv_init(keys[next(ki)], C, 2 * C, 1), "bn": _bn_init(C)}
    p["iou_conv"] = {"conv": _conv_init(keys[next(ki)], C // 2, C, 3), "bn": _bn_init(C // 2)}
    p["iou_out"] = _conv_init(keys[next(ki)], 1, C // 2, 1)
    p["scales"] = [jnp.float32(1.0) for _ in range(3)]          # Scale(init_value=1.0) x3
    return p


# -----------------------------------------------------------------------------
# Trace-time folding: BN/Scale -> conv weights, taps stacked, heads lane-packed
# -----------------------------------------------------------------------------
def _fold_bn(conv, bn):
    g = bn["gamma"] / jnp.sqrt(bn["var"] + _BN_EPS)
    be = bn["beta"] - bn["mean"] * g
    return conv["w"] * g[:, None, None], conv["b"] * g + be


def _stack_k3(w, b):
    # (Cout, Cin, 3) -> (3*Cin, Cout): row k*Cin+c multiplies x[t + k - 1][c]
    cout, cin, k = w.shape
    return jnp.transpose(w, (2, 1, 0)).reshape(k * cin, cout), b.reshape(1, cout)


def _pad_cols(w, b, off, out_pad):
    rows, cout = w.shape
    wp = jnp.zeros((rows, out_pad), jnp.float32).at[:, off:off + cout].set(w)
    bp = jnp.zeros((1, out_pad), jnp.float32).at[:, off:off + cout].set(b)
    return wp, bp


def fold_head_params(params, num_classes, out_pad=OUT_PAD):
    folded = {
        "cls_tower": [_stack_k3(*_fold_bn(l["conv"], l["bn"])) for l in params["cls_tower"]],
        "bbox_tower": [_stack_k3(*_fold_bn(l["conv"], l["bn"])) for l in params["bbox_tower"]],
        "cls_logits": _pad_cols(*_stack_k3(params["cls_logits"]["w"],
                                           params["cls_logits"]["b"]), 0, out_pad),
        "bbox_pred_raw": _stack_k3(params["bbox_pred"]["w"], params["bbox_pred"]["b"]),
        "bbox_mask": jnp.zeros((1, out_pad), jnp.float32)
                        .at[:, num_classes:num_classes + 2].set(1.0),
        "iou_conv": _stack_k3(*_fold_bn(params["iou_conv"]["conv"], params["iou_conv"]["bn"])),
        "num_classes": num_classes, "out_pad": out_pad,
    }
    mw, mb = _fold_bn(params["mix_fc"]["conv"], params["mix_fc"]["bn"])
    W1 = mw[:, :, 0].T                                          # (2C, C)
    C = W1.shape[1]
    folded["mix"] = (W1[:C, :], W1[C:, :], mb.reshape(1, C))    # split: cls half, box half
    ow = params["iou_out"]["w"][:, :, 0].T                      # (C//2, 1)
    ob = params["iou_out"]["b"].reshape(1, -1)
    folded["iou_out"] = _pad_cols(ow, ob, num_classes + 2, out_pad)
    return folded


def level_kernel_args(folded, scale_val):
    nc, out_pad = folded["num_classes"], folded["out_pad"]
    args = []
    for w, b in folded["cls_tower"]:
        args += [w, b]
    for w, b in folded["bbox_tower"]:
        args += [w, b]
    args += list(folded["cls_logits"])
    bw, bb = folded["bbox_pred_raw"]
    args += list(_pad_cols(bw * scale_val, bb * scale_val, nc, out_pad))  # Scale folded
    args.append(folded["bbox_mask"])
    args += list(folded["mix"])
    args += list(folded["iou_conv"])
    args += list(folded["iou_out"])
    return args


# -----------------------------------------------------------------------------
# FCOSModule forward (head + compute_locations); inference path
# -----------------------------------------------------------------------------
def fcos_module_forward(features_nct, params, fpn_strides):
    """features_nct: list of (N, C, T) arrays (PyTorch layout)."""
    num_classes = params["cls_logits"]["w"].shape[0]
    conv_layers = len(params["cls_tower"])
    folded = fold_head_params(params, num_classes)

    logits, bbox_reg, iou_scores, locations = [], [], [], []
    for idx, f in enumerate(features_nct):
        f_ntc = jnp.transpose(f, (0, 2, 1))                     # NCT -> NTC
        args = level_kernel_args(folded, params["scales"][idx])
        packed = fcos_head_level_pallas(f_ntc, args, conv_layers)
        nc = num_classes
        logits.append(jnp.transpose(packed[:, :, :nc], (0, 2, 1)))
        bbox_reg.append(jnp.transpose(packed[:, :, nc:nc + 2], (0, 2, 1)))
        iou_scores.append(jnp.transpose(packed[:, :, nc + 2:nc + 3], (0, 2, 1)))
        t = f.shape[-1]
        stride = fpn_strides[idx]
        locations.append(jnp.arange(0, t * stride, stride, dtype=jnp.float32) + stride / 2)
    # TODO(synk): make_fcos_postprocessor (NMS box selection) and
    # make_fcos_loss_evaluator (focal/IoU loss) are external factories not in
    # the reference source; the head outputs + locations they consume are
    # returned instead (is_second_stage detach is a no-op for forward values).
    return logits, bbox_reg, iou_scores, locations


# -----------------------------------------------------------------------------
# Pure-JAX reference (unfolded, independent path) for validation
# -----------------------------------------------------------------------------
def _ref_conv1d(x, w, b, padding):
    K, T = w.shape[-1], x.shape[1]
    xp = jnp.pad(x, ((0, 0), (padding, padding), (0, 0))) if padding else x
    y = sum(jnp.einsum("ntc,oc->nto", xp[:, k:k + T, :], w[:, :, k]) for k in range(K))
    return y + b[None, None, :]


def _ref_bn(x, bn):
    g = bn["gamma"] / jnp.sqrt(bn["var"] + _BN_EPS)
    return (x - bn["mean"]) * g + bn["beta"]


def _ref_head_level(x_ntc, params, scale_val):
    cls_t, box_t = x_ntc, x_ntc
    for l in params["cls_tower"]:
        cls_t = jax.nn.relu(_ref_bn(_ref_conv1d(cls_t, l["conv"]["w"], l["conv"]["b"], 1), l["bn"]))
    for l in params["bbox_tower"]:
        box_t = jax.nn.relu(_ref_bn(_ref_conv1d(box_t, l["conv"]["w"], l["conv"]["b"], 1), l["bn"]))
    logits = _ref_conv1d(cls_t, params["cls_logits"]["w"], params["cls_logits"]["b"], 1)
    bbox = jnp.exp(scale_val * _ref_conv1d(box_t, params["bbox_pred"]["w"],
                                           params["bbox_pred"]["b"], 1))
    mix_in = jnp.concatenate([cls_t, box_t], axis=-1)
    mix = jax.nn.relu(_ref_bn(_ref_conv1d(mix_in, params["mix_fc"]["conv"]["w"],
                                          params["mix_fc"]["conv"]["b"], 0), params["mix_fc"]["bn"]))
    iou_h = jax.nn.relu(_ref_bn(_ref_conv1d(mix, params["iou_conv"]["conv"]["w"],
                                            params["iou_conv"]["conv"]["b"], 1), params["iou_conv"]["bn"]))
    iou = _ref_conv1d(iou_h, params["iou_out"]["w"], params["iou_out"]["b"], 0)
    return logits, bbox, iou


# -----------------------------------------------------------------------------
if __name__ == "__main__":
    N = 2
    C = 32                    # in_channels
    fcos_num_class = 3        # -> num_classes = 2
    num_classes = fcos_num_class - 1
    fcos_conv_layers = 2
    fcos_prior_prob = 0.01
    fpn_strides = [8, 16, 32]
    level_T = [16, 8, 4]      # 3 FPN levels (module has 3 Scale()s)

    root = jax.random.PRNGKey(0)
    k_param, k_feat = jax.random.split(root)
    params = init_fcos_params(k_param, C, num_classes, fcos_conv_layers, fcos_prior_prob)

    feat_keys = jax.random.split(k_feat, len(level_T))
    features = [jax.random.normal(feat_keys[i], (N, C, level_T[i]), dtype=jnp.float32)
                for i in range(len(level_T))]  # PyTorch NCT layout

    logits, bbox_reg, iou_scores, locations = fcos_module_forward(
        features, params, fpn_strides)
    jax.block_until_ready((logits, bbox_reg, iou_scores, locations))

    # Validate every level against the independent pure-JAX reference.
    for idx, f in enumerate(features):
        f_ntc = jnp.transpose(f, (0, 2, 1))
        rl, rb, ri = _ref_head_level(f_ntc, params, params["scales"][idx])
        np.testing.assert_allclose(np.asarray(logits[idx]),
                                   np.asarray(jnp.transpose(rl, (0, 2, 1))),
                                   rtol=2e-4, atol=2e-5)
        np.testing.assert_allclose(np.asarray(bbox_reg[idx]),
                                   np.asarray(jnp.transpose(rb, (0, 2, 1))),
                                   rtol=2e-4, atol=2e-5)
        np.testing.assert_allclose(np.asarray(iou_scores[idx]),
                                   np.asarray(jnp.transpose(ri, (0, 2, 1))),
                                   rtol=2e-4, atol=2e-5)
        assert logits[idx].shape == (N, num_classes, level_T[idx])
        assert bbox_reg[idx].shape == (N, 2, level_T[idx])
        assert iou_scores[idx].shape == (N, 1, level_T[idx])
        stride = fpn_strides[idx]
        np.testing.assert_allclose(
            np.asarray(locations[idx]),
            np.arange(0, level_T[idx] * stride, stride, dtype=np.float32) + stride / 2)

    print("KERNEL_OK")
</pallas_src>

<mosaic_0001>
module attributes {stable_mosaic.version = 11 : i64} {
  func.func @_fcos_head_kernel(%arg0: i32, %arg1: memref<1x16x32xf32, #tpu.memory_space<vmem>>, %arg2: memref<96x32xf32, #tpu.memory_space<vmem>>, %arg3: memref<1x32xf32, #tpu.memory_space<vmem>>, %arg4: memref<96x32xf32, #tpu.memory_space<vmem>>, %arg5: memref<1x32xf32, #tpu.memory_space<vmem>>, %arg6: memref<96x32xf32, #tpu.memory_space<vmem>>, %arg7: memref<1x32xf32, #tpu.memory_space<vmem>>, %arg8: memref<96x32xf32, #tpu.memory_space<vmem>>, %arg9: memref<1x32xf32, #tpu.memory_space<vmem>>, %arg10: memref<96x128xf32, #tpu.memory_space<vmem>>, %arg11: memref<1x128xf32, #tpu.memory_space<vmem>>, %arg12: memref<96x128xf32, #tpu.memory_space<vmem>>, %arg13: memref<1x128xf32, #tpu.memory_space<vmem>>, %arg14: memref<1x128xf32, #tpu.memory_space<vmem>>, %arg15: memref<32x32xf32, #tpu.memory_space<vmem>>, %arg16: memref<32x32xf32, #tpu.memory_space<vmem>>, %arg17: memref<1x32xf32, #tpu.memory_space<vmem>>, %arg18: memref<96x16xf32, #tpu.memory_space<vmem>>, %arg19: memref<1x16xf32, #tpu.memory_space<vmem>>, %arg20: memref<16x128xf32, #tpu.memory_space<vmem>>, %arg21: memref<1x128xf32, #tpu.memory_space<vmem>>, %arg22: memref<1x16x128xf32, #tpu.memory_space<vmem>>) attributes {dimension_semantics = [#tpu.dimension_semantics<parallel>], iteration_bounds = array<i64: 2>, scalar_prefetch = 0 : i64, scratch_operands = 0 : i64, tpu.core_type = #tpu.core_type<tc>, window_params = [{transform_indices = @transform_0, window_bounds = array<i64: 1, 16, 32>}, {pipeline_mode = #tpu.pipeline_mode<synchronous>, transform_indices = @transform_1, window_bounds = array<i64: 96, 32>}, {pipeline_mode = #tpu.pipeline_mode<synchronous>, transform_indices = @transform_2, window_bounds = array<i64: 1, 32>}, {pipeline_mode = #tpu.pipeline_mode<synchronous>, transform_indices = @transform_3, window_bounds = array<i64: 96, 32>}, {pipeline_mode = #tpu.pipeline_mode<synchronous>, transform_indices = @transform_4, window_bounds = array<i64: 1, 32>}, {pipeline_mode = #tpu.pipeline_mode<synchronous>, transform_indices = @transform_5, window_bounds = array<i64: 96, 32>}, {pipeline_mode = #tpu.pipeline_mode<synchronous>, transform_indices = @transform_6, window_bounds = array<i64: 1, 32>}, {pipeline_mode = #tpu.pipeline_mode<synchronous>, transform_indices = @transform_7, window_bounds = array<i64: 96, 32>}, {pipeline_mode = #tpu.pipeline_mode<synchronous>, transform_indices = @transform_8, window_bounds = array<i64: 1, 32>}, {pipeline_mode = #tpu.pipeline_mode<synchronous>, transform_indices = @transform_9, window_bounds = array<i64: 96, 128>}, {pipeline_mode = #tpu.pipeline_mode<synchronous>, transform_indices = @transform_10, window_bounds = array<i64: 1, 128>}, {pipeline_mode = #tpu.pipeline_mode<synchronous>, transform_indices = @transform_11, window_bounds = array<i64: 96, 128>}, {pipeline_mode = #tpu.pipeline_mode<synchronous>, transform_indices = @transform_12, window_bounds = array<i64: 1, 128>}, {pipeline_mode = #tpu.pipeline_mode<synchronous>, transform_indices = @transform_13, window_bounds = array<i64: 1, 128>}, {pipeline_mode = #tpu.pipeline_mode<synchronous>, transform_indices = @transform_14, window_bounds = array<i64: 32, 32>}, {pipeline_mode = #tpu.pipeline_mode<synchronous>, transform_indices = @transform_15, window_bounds = array<i64: 32, 32>}, {pipeline_mode = #tpu.pipeline_mode<synchronous>, transform_indices = @transform_16, window_bounds = array<i64: 1, 32>}, {pipeline_mode = #tpu.pipeline_mode<synchronous>, transform_indices = @transform_17, window_bounds = array<i64: 96, 16>}, {pipeline_mode = #tpu.pipeline_mode<synchronous>, transform_indices = @transform_18, window_bounds = array<i64: 1, 16>}, {pipeline_mode = #tpu.pipeline_mode<synchronous>, transform_indices = @transform_19, window_bounds = array<i64: 16, 128>}, {pipeline_mode = #tpu.pipeline_mode<synchronous>, transform_indices = @transform_20, window_bounds = array<i64: 1, 128>}, {transform_indices = @transform_21, window_bounds = array<i64: 1, 16, 128>}]} {
    %c0 = arith.constant 0 : index
    %c0_0 = arith.constant 0 : index
    %c0_1 = arith.constant 0 : index
    %0 = vector.load %arg1[%c0, %c0_0, %c0_1] : memref<1x16x32xf32, #tpu.memory_space<vmem>>, vector<1x16x32xf32>
    %1 = vector.shape_cast %0 : vector<1x16x32xf32> to vector<16x32xf32>
    %2 = tpu.iota {dimensions = array<i32: 0>} : vector<16x1xi32>
    %c0_i32 = arith.constant 0 : i32
    %3 = vector.broadcast %c0_i32 : i32 to vector<16x1xi32>
    %4 = arith.cmpi sgt, %2, %3 : vector<16x1xi32>
    %5 = arith.extui %4 : vector<16x1xi1> to vector<16x1xi32>
    %6 = arith.sitofp %5 : vector<16x1xi32> to vector<16x1xf32>
    %c15_i32 = arith.constant 15 : i32
    %7 = vector.broadcast %c15_i32 : i32 to vector<16x1xi32>
    %8 = arith.cmpi slt, %2, %7 : vector<16x1xi32>
    %9 = arith.extui %8 : vector<16x1xi1> to vector<16x1xi32>
    %10 = arith.sitofp %9 : vector<16x1xi32> to vector<16x1xf32>
    %c1_i32 = arith.constant 1 : i32
    %11 = tpu.dynamic_rotate %1 by %c1_i32 dim 0 : vector<16x32xf32>, i32 -> vector<16x32xf32>
    %12 = vector.broadcast %6 : vector<16x1xf32> to vector<16x32xf32>
    %13 = arith.mulf %11, %12 : vector<16x32xf32>
    %c15_i32_2 = arith.constant 15 : i32
    %14 = tpu.dynamic_rotate %1 by %c15_i32_2 dim 0 : vector<16x32xf32>, i32 -> vector<16x32xf32>
    %15 = vector.broadcast %10 : vector<16x1xf32> to vector<16x32xf32>
    %16 = arith.mulf %14, %15 : vector<16x32xf32>
    %17 = tpu.concatenate %13, %1, %16 in 1 : vector<16x32xf32>, vector<16x32xf32>, vector<16x32xf32> -> vector<16x96xf32>
    %c0_3 = arith.constant 0 : index
    %c0_4 = arith.constant 0 : index
    %18 = vector.load %arg2[%c0_3, %c0_4] : memref<96x32xf32, #tpu.memory_space<vmem>>, vector<96x32xf32>
    %cst = arith.constant dense<0.000000e+00> : vector<16x32xf32>
    %19 = tpu.matmul %17, %18, %cst {dimension_numbers = #tpu.dot_dimension_numbers<[1], [0], [0], [1], [0, 0, 1, 1], [], []>} : vector<16x96xf32>, vector<96x32xf32>, vector<16x32xf32> -> vector<16x32xf32>
    %c0_5 = arith.constant 0 : index
    %c0_6 = arith.constant 0 : index
    %20 = vector.load %arg3[%c0_5, %c0_6] : memref<1x32xf32, #tpu.memory_space<vmem>>, vector<1x32xf32>
    %21 = vector.broadcast %20 : vector<1x32xf32> to vector<16x32xf32>
    %22 = arith.addf %19, %21 : vector<16x32xf32>
    %cst_7 = arith.constant 0.000000e+00 : f32
    %23 = vector.broadcast %cst_7 : f32 to vector<16x32xf32>
    %24 = arith.maximumf %22, %23 : vector<16x32xf32>
    %c1_i32_8 = arith.constant 1 : i32
    %25 = tpu.dynamic_rotate %24 by %c1_i32_8 dim 0 : vector<16x32xf32>, i32 -> vector<16x32xf32>
    %26 = vector.broadcast %6 : vector<16x1xf32> to vector<16x32xf32>
    %27 = arith.mulf %25, %26 : vector<16x32xf32>
    %c15_i32_9 = arith.constant 15 : i32
    %28 = tpu.dynamic_rotate %24 by %c15_i32_9 dim 0 : vector<16x32xf32>, i32 -> vector<16x32xf32>
    %29 = vector.broadcast %10 : vector<16x1xf32> to vector<16x32xf32>
    %30 = arith.mulf %28, %29 : vector<16x32xf32>
    %31 = tpu.concatenate %27, %24, %30 in 1 : vector<16x32xf32>, vector<16x32xf32>, vector<16x32xf32> -> vector<16x96xf32>
    %c0_10 = arith.constant 0 : index
    %c0_11 = arith.constant 0 : index
    %32 = vector.load %arg4[%c0_10, %c0_11] : memref<96x32xf32, #tpu.memory_space<vmem>>, vector<96x32xf32>
    %cst_12 = arith.constant dense<0.000000e+00> : vector<16x32xf32>
    %33 = tpu.matmul %31, %32, %cst_12 {dimension_numbers = #tpu.dot_dimension_numbers<[1], [0], [0], [1], [0, 0, 1, 1], [], []>} : vector<16x96xf32>, vector<96x32xf32>, vector<16x32xf32> -> vector<16x32xf32>
    %c0_13 = arith.constant 0 : index
    %c0_14 = arith.constant 0 : index
    %34 = vector.load %arg5[%c0_13, %c0_14] : memref<1x32xf32, #tpu.memory_space<vmem>>, vector<1x32xf32>
    %35 = vector.broadcast %34 : vector<1x32xf32> to vector<16x32xf32>
    %36 = arith.addf %33, %35 : vector<16x32xf32>
    %cst_15 = arith.constant 0.000000e+00 : f32
    %37 = vector.broadcast %cst_15 : f32 to vector<16x32xf32>
    %38 = arith.maximumf %36, %37 : vector<16x32xf32>
    %c1_i32_16 = arith.constant 1 : i32
    %39 = tpu.dynamic_rotate %1 by %c1_i32_16 dim 0 : vector<16x32xf32>, i32 -> vector<16x32xf32>
    %40 = vector.broadcast %6 : vector<16x1xf32> to vector<16x32xf32>
    %41 = arith.mulf %39, %40 : vector<16x32xf32>
    %c15_i32_17 = arith.constant 15 : i32
    %42 = tpu.dynamic_rotate %1 by %c15_i32_17 dim 0 : vector<16x32xf32>, i32 -> vector<16x32xf32>
    %43 = vector.broadcast %10 : vector<16x1xf32> to vector<16x32xf32>
    %44 = arith.mulf %42, %43 : vector<16x32xf32>
    %45 = tpu.concatenate %41, %1, %44 in 1 : vector<16x32xf32>, vector<16x32xf32>, vector<16x32xf32> -> vector<16x96xf32>
    %c0_18 = arith.constant 0 : index
    %c0_19 = arith.constant 0 : index
    %46 = vector.load %arg6[%c0_18, %c0_19] : memref<96x32xf32, #tpu.memory_space<vmem>>, vector<96x32xf32>
    %cst_20 = arith.constant dense<0.000000e+00> : vector<16x32xf32>
    %47 = tpu.matmul %45, %46, %cst_20 {dimension_numbers = #tpu.dot_dimension_numbers<[1], [0], [0], [1], [0, 0, 1, 1], [], []>} : vector<16x96xf32>, vector<96x32xf32>, vector<16x32xf32> -> vector<16x32xf32>
    %c0_21 = arith.constant 0 : index
    %c0_22 = arith.constant 0 : index
    %48 = vector.load %arg7[%c0_21, %c0_22] : memref<1x32xf32, #tpu.memory_space<vmem>>, vector<1x32xf32>
    %49 = vector.broadcast %48 : vector<1x32xf32> to vector<16x32xf32>
    %50 = arith.addf %47, %49 : vector<16x32xf32>
    %cst_23 = arith.constant 0.000000e+00 : f32
    %51 = vector.broadcast %cst_23 : f32 to vector<16x32xf32>
    %52 = arith.maximumf %50, %51 : vector<16x32xf32>
    %c1_i32_24 = arith.constant 1 : i32
    %53 = tpu.dynamic_rotate %52 by %c1_i32_24 dim 0 : vector<16x32xf32>, i32 -> vector<16x32xf32>
    %54 = vector.broadcast %6 : vector<16x1xf32> to vector<16x32xf32>
    %55 = arith.mulf %53, %54 : vector<16x32xf32>
    %c15_i32_25 = arith.constant 15 : i32
    %56 = tpu.dynamic_rotate %52 by %c15_i32_25 dim 0 : vector<16x32xf32>, i32 -> vector<16x32xf32>
    %57 = vector.broadcast %10 : vector<16x1xf32> to vector<16x32xf32>
    %58 = arith.mulf %56, %57 : vector<16x32xf32>
    %59 = tpu.concatenate %55, %52, %58 in 1 : vector<16x32xf32>, vector<16x32xf32>, vector<16x32xf32> -> vector<16x96xf32>
    %c0_26 = arith.constant 0 : index
    %c0_27 = arith.constant 0 : index
    %60 = vector.load %arg8[%c0_26, %c0_27] : memref<96x32xf32, #tpu.memory_space<vmem>>, vector<96x32xf32>
    %cst_28 = arith.constant dense<0.000000e+00> : vector<16x32xf32>
    %61 = tpu.matmul %59, %60, %cst_28 {dimension_numbers = #tpu.dot_dimension_numbers<[1], [0], [0], [1], [0, 0, 1, 1], [], []>} : vector<16x96xf32>, vector<96x32xf32>, vector<16x32xf32> -> vector<16x32xf32>
    %c0_29 = arith.constant 0 : index
    %c0_30 = arith.constant 0 : index
    %62 = vector.load %arg9[%c0_29, %c0_30] : memref<1x32xf32, #tpu.memory_space<vmem>>, vector<1x32xf32>
    %63 = vector.broadcast %62 : vector<1x32xf32> to vector<16x32xf32>
    %64 = arith.addf %61, %63 : vector<16x32xf32>
    %cst_31 = arith.constant 0.000000e+00 : f32
    %65 = vector.broadcast %cst_31 : f32 to vector<16x32xf32>
    %66 = arith.maximumf %64, %65 : vector<16x32xf32>
    %c1_i32_32 = arith.constant 1 : i32
    %67 = tpu.dynamic_rotate %38 by %c1_i32_32 dim 0 : vector<16x32xf32>, i32 -> vector<16x32xf32>
    %68 = vector.broadcast %6 : vector<16x1xf32> to vector<16x32xf32>
    %69 = arith.mulf %67, %68 : vector<16x32xf32>
    %c15_i32_33 = arith.constant 15 : i32
    %70 = tpu.dynamic_rotate %38 by %c15_i32_33 dim 0 : vector<16x32xf32>, i32 -> vector<16x32xf32>
    %71 = vector.broadcast %10 : vector<16x1xf32> to vector<16x32xf32>
    %72 = arith.mulf %70, %71 : vector<16x32xf32>
    %73 = tpu.concatenate %69, %38, %72 in 1 : vector<16x32xf32>, vector<16x32xf32>, vector<16x32xf32> -> vector<16x96xf32>
    %c0_34 = arith.constant 0 : index
    %c0_35 = arith.constant 0 : index
    %74 = vector.load %arg10[%c0_34, %c0_35] : memref<96x128xf32, #tpu.memory_space<vmem>>, vector<96x128xf32>
    %cst_36 = arith.constant dense<0.000000e+00> : vector<16x128xf32>
    %75 = tpu.matmul %73, %74, %cst_36 {dimension_numbers = #tpu.dot_dimension_numbers<[1], [0], [0], [1], [0, 0, 1, 1], [], []>} : vector<16x96xf32>, vector<96x128xf32>, vector<16x128xf32> -> vector<16x128xf32>
    %c0_37 = arith.constant 0 : index
    %c0_38 = arith.constant 0 : index
    %76 = vector.load %arg11[%c0_37, %c0_38] : memref<1x128xf32, #tpu.memory_space<vmem>>, vector<1x128xf32>
    %77 = vector.broadcast %76 : vector<1x128xf32> to vector<16x128xf32>
    %78 = arith.addf %75, %77 : vector<16x128xf32>
    %c1_i32_39 = arith.constant 1 : i32
    %79 = tpu.dynamic_rotate %66 by %c1_i32_39 dim 0 : vector<16x32xf32>, i32 -> vector<16x32xf32>
    %80 = vector.broadcast %6 : vector<16x1xf32> to vector<16x32xf32>
    %81 = arith.mulf %79, %80 : vector<16x32xf32>
    %c15_i32_40 = arith.constant 15 : i32
    %82 = tpu.dynamic_rotate %66 by %c15_i32_40 dim 0 : vector<16x32xf32>, i32 -> vector<16x32xf32>
    %83 = vector.broadcast %10 : vector<16x1xf32> to vector<16x32xf32>
    %84 = arith.mulf %82, %83 : vector<16x32xf32>
    %85 = tpu.concatenate %81, %66, %84 in 1 : vector<16x32xf32>, vector<16x32xf32>, vector<16x32xf32> -> vector<16x96xf32>
    %c0_41 = arith.constant 0 : index
    %c0_42 = arith.constant 0 : index
    %86 = vector.load %arg12[%c0_41, %c0_42] : memref<96x128xf32, #tpu.memory_space<vmem>>, vector<96x128xf32>
    %cst_43 = arith.constant dense<0.000000e+00> : vector<16x128xf32>
    %87 = tpu.matmul %85, %86, %cst_43 {dimension_numbers = #tpu.dot_dimension_numbers<[1], [0], [0], [1], [0, 0, 1, 1], [], []>} : vector<16x96xf32>, vector<96x128xf32>, vector<16x128xf32> -> vector<16x128xf32>
    %c0_44 = arith.constant 0 : index
    %c0_45 = arith.constant 0 : index
    %88 = vector.load %arg13[%c0_44, %c0_45] : memref<1x128xf32, #tpu.memory_space<vmem>>, vector<1x128xf32>
    %89 = vector.broadcast %88 : vector<1x128xf32> to vector<16x128xf32>
    %90 = arith.addf %87, %89 : vector<16x128xf32>
    %91 = math.exp %90 : vector<16x128xf32>
    %c0_46 = arith.constant 0 : index
    %c0_47 = arith.constant 0 : index
    %92 = vector.load %arg14[%c0_46, %c0_47] : memref<1x128xf32, #tpu.memory_space<vmem>>, vector<1x128xf32>
    %93 = vector.broadcast %92 : vector<1x128xf32> to vector<16x128xf32>
    %94 = arith.mulf %91, %93 : vector<16x128xf32>
    %c0_48 = arith.constant 0 : index
    %c0_49 = arith.constant 0 : index
    %95 = vector.load %arg15[%c0_48, %c0_49] : memref<32x32xf32, #tpu.memory_space<vmem>>, vector<32x32xf32>
    %cst_50 = arith.constant dense<0.000000e+00> : vector<16x32xf32>
    %96 = tpu.matmul %38, %95, %cst_50 {dimension_numbers = #tpu.dot_dimension_numbers<[1], [0], [0], [1], [0, 0, 1, 1], [], []>} : vector<16x32xf32>, vector<32x32xf32>, vector<16x32xf32> -> vector<16x32xf32>
    %c0_51 = arith.constant 0 : index
    %c0_52 = arith.constant 0 : index
    %97 = vector.load %arg16[%c0_51, %c0_52] : memref<32x32xf32, #tpu.memory_space<vmem>>, vector<32x32xf32>
    %cst_53 = arith.constant dense<0.000000e+00> : vector<16x32xf32>
    %98 = tpu.matmul %66, %97, %cst_53 {dimension_numbers = #tpu.dot_dimension_numbers<[1], [0], [0], [1], [0, 0, 1, 1], [], []>} : vector<16x32xf32>, vector<32x32xf32>, vector<16x32xf32> -> vector<16x32xf32>
    %99 = arith.addf %96, %98 : vector<16x32xf32>
    %c0_54 = arith.constant 0 : index
    %c0_55 = arith.constant 0 : index
    %100 = vector.load %arg17[%c0_54, %c0_55] : memref<1x32xf32, #tpu.memory_space<vmem>>, vector<1x32xf32>
    %101 = vector.broadcast %100 : vector<1x32xf32> to vector<16x32xf32>
    %102 = arith.addf %99, %101 : vector<16x32xf32>
    %cst_56 = arith.constant 0.000000e+00 : f32
    %103 = vector.broadcast %cst_56 : f32 to vector<16x32xf32>
    %104 = arith.maximumf %102, %103 : vector<16x32xf32>
    %c1_i32_57 = arith.constant 1 : i32
    %105 = tpu.dynamic_rotate %104 by %c1_i32_57 dim 0 : vector<16x32xf32>, i32 -> vector<16x32xf32>
    %106 = vector.broadcast %6 : vector<16x1xf32> to vector<16x32xf32>
    %107 = arith.mulf %105, %106 : vector<16x32xf32>
    %c15_i32_58 = arith.constant 15 : i32
    %108 = tpu.dynamic_rotate %104 by %c15_i32_58 dim 0 : vector<16x32xf32>, i32 -> vector<16x32xf32>
    %109 = vector.broadcast %10 : vector<16x1xf32> to vector<16x32xf32>
    %110 = arith.mulf %108, %109 : vector<16x32xf32>
    %111 = tpu.concatenate %107, %104, %110 in 1 : vector<16x32xf32>, vector<16x32xf32>, vector<16x32xf32> -> vector<16x96xf32>
    %c0_59 = arith.constant 0 : index
    %c0_60 = arith.constant 0 : index
    %112 = vector.load %arg18[%c0_59, %c0_60] : memref<96x16xf32, #tpu.memory_space<vmem>>, vector<96x16xf32>
    %cst_61 = arith.constant dense<0.000000e+00> : vector<16x16xf32>
    %113 = tpu.matmul %111, %112, %cst_61 {dimension_numbers = #tpu.dot_dimension_numbers<[1], [0], [0], [1], [0, 0, 1, 1], [], []>} : vector<16x96xf32>, vector<96x16xf32>, vector<16x16xf32> -> vector<16x16xf32>
    %c0_62 = arith.constant 0 : index
    %c0_63 = arith.constant 0 : index
    %114 = vector.load %arg19[%c0_62, %c0_63] : memref<1x16xf32, #tpu.memory_space<vmem>>, vector<1x16xf32>
    %115 = vector.broadcast %114 : vector<1x16xf32> to vector<16x16xf32>
    %116 = arith.addf %113, %115 : vector<16x16xf32>
    %cst_64 = arith.constant 0.000000e+00 : f32
    %117 = vector.broadcast %cst_64 : f32 to vector<16x16xf32>
    %118 = arith.maximumf %116, %117 : vector<16x16xf32>
    %c0_65 = arith.constant 0 : index
    %c0_66 = arith.constant 0 : index
    %119 = vector.load %arg20[%c0_65, %c0_66] : memref<16x128xf32, #tpu.memory_space<vmem>>, vector<16x128xf32>
    %cst_67 = arith.constant dense<0.000000e+00> : vector<16x128xf32>
    %120 = tpu.matmul %118, %119, %cst_67 {dimension_numbers = #tpu.dot_dimension_numbers<[1], [0], [0], [1], [0, 0, 1, 1], [], []>} : vector<16x16xf32>, vector<16x128xf32>, vector<16x128xf32> -> vector<16x128xf32>
    %c0_68 = arith.constant 0 : index
    %c0_69 = arith.constant 0 : index
    %121 = vector.load %arg21[%c0_68, %c0_69] : memref<1x128xf32, #tpu.memory_space<vmem>>, vector<1x128xf32>
    %122 = vector.broadcast %121 : vector<1x128xf32> to vector<16x128xf32>
    %123 = arith.addf %120, %122 : vector<16x128xf32>
    %124 = arith.addf %78, %94 : vector<16x128xf32>
    %125 = arith.addf %124, %123 : vector<16x128xf32>
    %c0_70 = arith.constant 0 : index
    %c0_71 = arith.constant 0 : index
    %c0_72 = arith.constant 0 : index
    %126 = vector.load %arg22[%c0_70, %c0_71, %c0_72] : memref<1x16x128xf32, #tpu.memory_space<vmem>>, vector<1x16x128xf32>
    %127 = vector.shape_cast %126 : vector<1x16x128xf32> to vector<16x128xf32>
    %128 = vector.shape_cast %125 : vector<16x128xf32> to vector<1x16x128xf32>
    tpu.vector_store %arg22[%c0_70, %c0_71, %c0_72], %128 {strides = array<i32>} : memref<1x16x128xf32, #tpu.memory_space<vmem>>, vector<1x16x128xf32>,
    return
  }
  func.func @transform_0(%arg0: i32) -> (i32, i32, i32) {
    %c0_i32 = arith.constant 0 : i32
    %c0_i32_0 = arith.constant 0 : i32
    %c0_i32_1 = arith.constant 0 : i32
    return %arg0, %c0_i32, %c0_i32_0 : i32, i32, i32
  }
  func.func @transform_1(%arg0: i32) -> (i32, i32) {
    %c0_i32 = arith.constant 0 : i32
    %c0_i32_0 = arith.constant 0 : i32
    %c0_i32_1 = arith.constant 0 : i32
    return %c0_i32, %c0_i32_0 : i32, i32
  }
  func.func @transform_2(%arg0: i32) -> (i32, i32) {
    %c0_i32 = arith.constant 0 : i32
    %c0_i32_0 = arith.constant 0 : i32
    %c0_i32_1 = arith.constant 0 : i32
    return %c0_i32, %c0_i32_0 : i32, i32
  }
  func.func @transform_3(%arg0: i32) -> (i32, i32) {
    %c0_i32 = arith.constant 0 : i32
    %c0_i32_0 = arith.constant 0 : i32
    %c0_i32_1 = arith.constant 0 : i32
    return %c0_i32, %c0_i32_0 : i32, i32
  }
  func.func @transform_4(%arg0: i32) -> (i32, i32) {
    %c0_i32 = arith.constant 0 : i32
    %c0_i32_0 = arith.constant 0 : i32
    %c0_i32_1 = arith.constant 0 : i32
    return %c0_i32, %c0_i32_0 : i32, i32
  }
  func.func @transform_5(%arg0: i32) -> (i32, i32) {
    %c0_i32 = arith.constant 0 : i32
    %c0_i32_0 = arith.constant 0 : i32
    %c0_i32_1 = arith.constant 0 : i32
    return %c0_i32, %c0_i32_0 : i32, i32
  }
  func.func @transform_6(%arg0: i32) -> (i32, i32) {
    %c0_i32 = arith.constant 0 : i32
    %c0_i32_0 = arith.constant 0 : i32
    %c0_i32_1 = arith.constant 0 : i32
    return %c0_i32, %c0_i32_0 : i32, i32
  }
  func.func @transform_7(%arg0: i32) -> (i32, i32) {
    %c0_i32 = arith.constant 0 : i32
    %c0_i32_0 = arith.constant 0 : i32
    %c0_i32_1 = arith.constant 0 : i32
    return %c0_i32, %c0_i32_0 : i32, i32
  }
  func.func @transform_8(%arg0: i32) -> (i32, i32) {
    %c0_i32 = arith.constant 0 : i32
    %c0_i32_0 = arith.constant 0 : i32
    %c0_i32_1 = arith.constant 0 : i32
    return %c0_i32, %c0_i32_0 : i32, i32
  }
  func.func @transform_9(%arg0: i32) -> (i32, i32) {
    %c0_i32 = arith.constant 0 : i32
    %c0_i32_0 = arith.constant 0 : i32
    %c0_i32_1 = arith.constant 0 : i32
    return %c0_i32, %c0_i32_0 : i32, i32
  }
  func.func @transform_10(%arg0: i32) -> (i32, i32) {
    %c0_i32 = arith.constant 0 : i32
    %c0_i32_0 = arith.constant 0 : i32
    %c0_i32_1 = arith.constant 0 : i32
    return %c0_i32, %c0_i32_0 : i32, i32
  }
  func.func @transform_11(%arg0: i32) -> (i32, i32) {
    %c0_i32 = arith.constant 0 : i32
    %c0_i32_0 = arith.constant 0 : i32
    %c0_i32_1 = arith.constant 0 : i32
    return %c0_i32, %c0_i32_0 : i32, i32
  }
  func.func @transform_12(%arg0: i32) -> (i32, i32) {
    %c0_i32 = arith.constant 0 : i32
    %c0_i32_0 = arith.constant 0 : i32
    %c0_i32_1 = arith.constant 0 : i32
    return %c0_i32, %c0_i32_0 : i32, i32
  }
  func.func @transform_13(%arg0: i32) -> (i32, i32) {
    %c0_i32 = arith.constant 0 : i32
    %c0_i32_0 = arith.constant 0 : i32
    %c0_i32_1 = arith.constant 0 : i32
    return %c0_i32, %c0_i32_0 : i32, i32
  }
  func.func @transform_14(%arg0: i32) -> (i32, i32) {
    %c0_i32 = arith.constant 0 : i32
    %c0_i32_0 = arith.constant 0 : i32
    %c0_i32_1 = arith.constant 0 : i32
    return %c0_i32, %c0_i32_0 : i32, i32
  }
  func.func @transform_15(%arg0: i32) -> (i32, i32) {
    %c0_i32 = arith.constant 0 : i32
    %c0_i32_0 = arith.constant 0 : i32
    %c0_i32_1 = arith.constant 0 : i32
    return %c0_i32, %c0_i32_0 : i32, i32
  }
  func.func @transform_16(%arg0: i32) -> (i32, i32) {
    %c0_i32 = arith.constant 0 : i32
    %c0_i32_0 = arith.constant 0 : i32
    %c0_i32_1 = arith.constant 0 : i32
    return %c0_i32, %c0_i32_0 : i32, i32
  }
  func.func @transform_17(%arg0: i32) -> (i32, i32) {
    %c0_i32 = arith.constant 0 : i32
    %c0_i32_0 = arith.constant 0 : i32
    %c0_i32_1 = arith.constant 0 : i32
    return %c0_i32, %c0_i32_0 : i32, i32
  }
  func.func @transform_18(%arg0: i32) -> (i32, i32) {
    %c0_i32 = arith.constant 0 : i32
    %c0_i32_0 = arith.constant 0 : i32
    %c0_i32_1 = arith.constant 0 : i32
    return %c0_i32, %c0_i32_0 : i32, i32
  }
  func.func @transform_19(%arg0: i32) -> (i32, i32) {
    %c0_i32 = arith.constant 0 : i32
    %c0_i32_0 = arith.constant 0 : i32
    %c0_i32_1 = arith.constant 0 : i32
    return %c0_i32, %c0_i32_0 : i32, i32
  }
  func.func @transform_20(%arg0: i32) -> (i32, i32) {
    %c0_i32 = arith.constant 0 : i32
    %c0_i32_0 = arith.constant 0 : i32
    %c0_i32_1 = arith.constant 0 : i32
    return %c0_i32, %c0_i32_0 : i32, i32
  }
  func.func @transform_21(%arg0: i32) -> (i32, i32, i32) {
    %c0_i32 = arith.constant 0 : i32
    %c0_i32_0 = arith.constant 0 : i32
    %c0_i32_1 = arith.constant 0 : i32
    return %arg0, %c0_i32, %c0_i32_0 : i32, i32, i32
  }
}

</mosaic_0001>

<bundles_post_ra>
// kernel: tpu_custom_call.1
= control target key start
LH: loop header
LB: loop body
LE: loop exit
PB: predicated region body
PF: predicated region fallthrough
CT: control target
= control target key end

     0   :  { %s3307_s0 = inlined_call_operand.vmem [shape: f32[2,16,32], index: 0, kind: input, shape index: {}]   ;;  %s3308_s1 = inlined_call_operand.vmem [shape: f32[96,32], index: 1, kind: input, shape index: {}]   ;;  %s3309_s2 = inlined_call_operand.vmem [shape: f32[1,32], index: 2, kind: input, shape index: {}]   ;;  %s3310_s3 = inlined_call_operand.vmem [shape: f32[96,32], index: 3, kind: input, shape index: {}]   ;;  %s3311_s4 = inlined_call_operand.vmem [shape: f32[1,32], index: 4, kind: input, shape index: {}]   ;;  %s3312_s5 = inlined_call_operand.vmem [shape: f32[96,32], index: 5, kind: input, shape index: {}]   ;;  %s3313_s6 = inlined_call_operand.vmem [shape: f32[1,32], index: 6, kind: input, shape index: {}]   ;;  %s3314_s7 = inlined_call_operand.vmem [shape: f32[96,32], index: 7, kind: input, shape index: {}]   ;;  %s3315_s8 = inlined_call_operand.vmem [shape: f32[1,32], index: 8, kind: input, shape index: {}]   ;;  %s3316_s9 = inlined_call_operand.vmem [shape: f32[96,128], index: 9, kind: input, shape index: {}]   ;;  %s3317_s10 = inlined_call_operand.vmem [shape: f32[1,128], index: 10, kind: input, shape index: {}]   ;;  %s3318_s11 = inlined_call_operand.vmem [shape: f32[96,128], index: 11, kind: input, shape index: {}]   ;;  %s3319_s12 = inlined_call_operand.vmem [shape: f32[1,128], index: 12, kind: input, shape index: {}]   ;;  %s3320_s13 = inlined_call_operand.vmem [shape: f32[1,128], index: 13, kind: input, shape index: {}]   ;;  %s3321_s14 = inlined_call_operand.vmem [shape: f32[32,32], index: 14, kind: input, shape index: {}]   ;;  %s3322_s15 = inlined_call_operand.vmem [shape: f32[32,32], index: 15, kind: input, shape index: {}]   ;;  %s3323_s16 = inlined_call_operand.vmem [shape: f32[1,32], index: 16, kind: input, shape index: {}]   ;;  %s3324_s17 = inlined_call_operand.vmem [shape: f32[96,16], index: 17, kind: input, shape index: {}]   ;;  %s3325_s18 = inlined_call_operand.vmem [shape: f32[1,16], index: 18, kind: input, shape index: {}]   ;;  %s3326_s19 = inlined_call_operand.vmem [shape: f32[16,128], index: 19, kind: input, shape index: {}]   ;;  %s3327_s20 = inlined_call_operand.vmem [shape: f32[1,128], index: 20, kind: input, shape index: {}]   ;;  %s3328_s21 = inlined_call_operand.hbm [shape: f32[2,16,128], index: 21, kind: output, shape index: {}]  }
   0x1   :  { %3343 = sst [smem:[#allocation10_spill]] %s3307_s0 }
   0x2   :  { %3344 = sst [smem:[#allocation11_spill]] %s3308_s1 }
   0x3   :  { %3345 = sst [smem:[#allocation12_spill]] %s3309_s2 }
   0x4   :  { %3346 = sst [smem:[#allocation13_spill]] %s3310_s3 }
   0x5   :  { %3347 = sst [smem:[#allocation14_spill]] %s3311_s4 }
   0x6   :  { %3348 = sst [smem:[#allocation15_spill]] %s3312_s5 }
   0x7   :  { %3349 = sst [smem:[#allocation16_spill]] %s3313_s6 }
   0x8   :  { %3350 = sst [smem:[#allocation17_spill]] %s3314_s7 }
   0x9   :  { %3351 = sst [smem:[#allocation18_spill]] %s3316_s9 }
   0xa   :  { %26 = vsyncpa [#allocation3], 0 }
   0xb   :  { %28 = vsyncpa [#allocation3 + $0x1], 0  ;;  %s2740_s2 = smov 0   ;;  %s2742_s25 = smov 0  }
   0xc   :  { %s2744_s26 = smov 0   ;;  %s2746_s27 = smov 0  }
   0xd LB: > { %3352 = sst [smem:[#allocation5_spill]] %s2610_s2  ;;  %s2761_s3 = sadd.s32 4294967295, %s2622_s27   ;;  %s2622_s27 = sphi %s2746_s27, %s3372_s27   ;;  %s2618_s26 = sphi %s2744_s26, %s3374_s26   ;;  %s2614_s25 = sphi %s2742_s25, %s3376_s25   ;;  %s2610_s2 = sphi %s2740_s2, %s3375_s2  }
   0xe   : > { %3353 = sst [smem:[#allocation6_spill]] %s2618_s26  ;;  %s1936_s28 = sadd.s32 4294967294, %s2622_s27  }
   0xf   : > { %s2765_s29 = sadd.s32 1, %s2622_s27   ;;  %s487_s0 = sadd.s32 1, %s2618_s26 }
  0x10   : > { %3354 = sst [smem:[#allocation7_spill]] %s2765_s29  ;;  %s484_s4 = ssub.s32 %s2622_s27, %s2765_s29 }
  0x11   : > { %p497_p0 = scmp.ne.s32.totalorder %s2618_s26, %s2614_s25  ;;  %p485_p1 = scmp.eq.s32.totalorder %s484_s4, 0 }
  0x12   : > { %p498_p2 = scmp.eq.s32.totalorder %s2761_s3, 1  ;;  %p503_p3 = scmp.ne.s32.totalorder %s2614_s25, %s2610_s2 }
  0x13   : > { %p504_p4 = scmp.eq.s32.totalorder %s1936_s28, 1  ;;  %p1939_p7 = scmp.ge.s32.totalorder %s2622_s27, 1 }
  0x14   : > { %s2776_s30 = scalar_select %p485_p1, %s2618_s26, %s487_s0  }
  0x15   : > { %p2778_p5 = por %p498_p2, %p497_p0  ;;  %p2782_p6 = por %p504_p4, %p503_p3 }
  0x16   : > { %3355 = sst [smem:[#allocation8_spill]] %s2776_s30  ;;  %p590_p8 = scmp.lt.s32.totalorder %s2622_s27, 3 }
  0x17   : > { %s3357_s22 = scalar_select %p2782_p6, 1, 0 }
  0x18   : > { %p591_p9 = pnand %p1939_p7, %p590_p8 }
  0x19   : > { %3358 = sst [smem:[#allocation9_spill]] %s3357_s22  ;;  %p650_p10 = scmp.lt.s32.totalorder (!%p591_p9), %s2761_s3, 1  ;;  %v657_v0 = vlaneseq (!%p591_p9)  ;;  %v2624_v11 = vmov (!%p591_p9), 0.0   ;;  %vm702_vm4 = vcmask (!%p591_p9), 261120   ;;  %vm705_vm5 = vcmask (!%p591_p9), 523264  }
  0x1a   : > { %594 = sbr.rel (%p591_p9) target bundleno = 1641 (0x669), region = 104  ;;  %s3359_s24 = sld [smem:[#allocation11_spill]] (!%p591_p9)  ;;  %vm727_vm6 = vcmask (!%p591_p9), 785408   ;;  %vm1772_vm7 = vcmask (!%p591_p9), 130048  }
  0x1b   : > { %v2802_v6 = vshrl.u32 (!%p591_p9), %v657_v0, 7  ;;  %s3360_s0 = sld [smem:[#allocation10_spill]] (!%p591_p9)  ;;  %s3337_s28 = smov (!%p591_p9), 32  }
  0x1c   : > { %s3362_s29 = sld [smem:[#allocation13_spill]] (!%p591_p9)  ;;  %s3363_s7 = sld [smem:[#allocation17_spill]] (!%p591_p9) }
  0x1d   : > { %v659_v10 = vadd.s32 (!%p591_p9), 8, %v2802_v6  ;;  %vm660_vm0 = vcmp.gt.s32.totalorder (!%p591_p9), %v2802_v6, 0  ;;  %vm681_vm1 = vcmp.lt.s32.totalorder (!%p591_p9), %v2802_v6, 7  ;;  %vm674_vm3 = vcmp.lt.s32.totalorder (!%p591_p9), %v2802_v6, 1  ;;  %s3365_s26 = smov (!%p591_p9), 32   ;;  %s3367_s6 = sld [smem:[#allocation16_spill]] (!%p591_p9) }
  0x1e   : > { %v2815_v12 = vsel (!%p591_p9), %vm660_vm0, 1.0, %v2624_v11  ;;  %s3368_s9 = sld [smem:[#allocation18_spill]] (!%p591_p9) }
  0x1f   : > { %vm667_vm2 = vcmp.lt.s32.totalorder (!%p591_p9), %v659_v10, 15 }
  0x20   : > { %v708_v1 = vld [vmem:[%s3359_s24] sm:$0xff] (!%p591_p9)  ;;  %v709_v2 = vld [vmem:[%s3359_s24 + $0x8] sm:$0xff] (!%p591_p9)  ;;  %v710_v3 = vld [vmem:[%s3359_s24 + $0x10] sm:$0xff] (!%p591_p9)  ;;  %v2826_v22 = vsel (!%p591_p9), %vm667_vm2, 1.0, %v2624_v11 }
  0x21   : > { %v2314_v4 = vpack.c.bf16 %v709_v2, %v708_v1  ;;  %v711_v5 = vld [vmem:[%s3359_s24 + $0x18] sm:$0xff]  ;;  %s651_s22 = scalar_select %p650_p10, %s2761_s3, 1  ;;  %v712_v8 = vld [vmem:[%s3359_s24 + $0x20] sm:$0xff]  ;;  %v713_v9 = vld [vmem:[%s3359_s24 + $0x28] sm:$0xff] }
  0x22   : > { %v2318_v7 = vpack.c.bf16 %v711_v5, %v710_v3  ;;  %v2322_v13 = vpack.c.bf16 %v713_v9, %v712_v8  ;;  %v714_v14 = vld [vmem:[%s3359_s24 + $0x30] sm:$0xff]  ;;  %v715_v15 = vld [vmem:[%s3359_s24 + $0x38] sm:$0xff]  ;;  %v716_v29 = vld [vmem:[%s3359_s24 + $0x40] sm:$0xff] }
  0x23   : > { %2315 = vmatprep.subr.bf16.mxu0 %v2314_v4  ;;  %s1980_s30 = sshll.u32 %s651_s22, 4  ;;  %v2326_v23 = vpack.c.bf16 %v715_v15, %v714_v14  ;;  %v717_v30 = vld [vmem:[%s3359_s24 + $0x48] sm:$0xff]  ;;  %v718_v32 = vld [vmem:[%s3359_s24 + $0x50] sm:$0xff]  ;;  %v719_v33 = vld [vmem:[%s3359_s24 + $0x58] sm:$0xff]  ;;  %s3364_s22 = sld [smem:[#allocation12_spill]] }
  0x24   : > { %2317 = vmatpush3.bf16.msra.mxu0 %v2314_v4  ;;  %s654_s4 = scalar_lea.vmem %s3360_s0, %s1980_s30  ;;  %s3339_s30 = smov 64   ;;  %v2330_v31 = vpack.c.bf16 %v717_v30, %v716_v29  ;;  %v2334_v34 = vpack.c.bf16 %v719_v33, %v718_v32  ;;  %v843_v62 = vld [vmem:[%s3362_s29] sm:$0xff]  ;;  %v844_v63 = vld [vmem:[%s3362_s29 + $0x8] sm:$0xff]  ;;  %v845_v0 = vld [vmem:[%s3362_s29 + $0x10] sm:$0xff] }
  0x25   : > { %2319 = vmatprep.subr.bf16.mxu0 %v2318_v7  ;;  %v655_v16 = vld [vmem:[%s654_s4] sm:$0xff]  ;;  %v656_v17 = vld [vmem:[%s654_s4 + $0x8] sm:$0xff]  ;;  %s3361_s0 = sld [smem:[#allocation15_spill]]  ;;  %v2338_v1 = vpack.c.bf16 %v844_v63, %v843_v62  ;;  %v846_v2 = vld [vmem:[%s3362_s29 + $0x18] sm:$0xff] }
  0x26   : > { %v673_v18 = vrot.slane %v656_v17, 7  ;;  %688 = vrot.lane.b32.xlu0 %v655_v16, %s3337_s28  ;;  %v672_v19 = vrot.slane %v655_v16, 7  ;;  %v679_v20 = vrot.slane %v655_v16, 1  ;;  %v680_v21 = vrot.slane %v656_v17, 1  ;;  %v847_v4 = vld [vmem:[%s3362_s29 + $0x20] sm:$0xff]  ;;  %v848_v5 = vld [vmem:[%s3362_s29 + $0x28] sm:$0xff] }
  0x27   : > { %v2342_v3 = vpack.c.bf16 %v846_v2, %v845_v0  ;;  %2339 = vmatprep.subr.bf16.mxu1 %v2338_v1  ;;  %v849_v8 = vld [vmem:[%s3362_s29 + $0x30] sm:$0xff]  ;;  %v850_v9 = vld [vmem:[%s3362_s29 + $0x38] sm:$0xff]  ;;  %v851_v11 = vld [vmem:[%s3362_s29 + $0x40] sm:$0xff] }
  0x28   : > { %2321 = vmatpush3.bf16.msra.mxu0 %v2318_v7  ;;  %v682_v24 = vsel %vm681_vm1, %v679_v20, %v680_v21  ;;  %v683_v25 = vsel %vm681_vm1, %v680_v21, %v679_v20  ;;  %v676_v26 = vsel %vm674_vm3, %v673_v18, %v672_v19  ;;  %v675_v27 = vsel %vm674_vm3, %v672_v19, %v673_v18  ;;  %v853_v15 = vld [vmem:[%s3362_s29 + $0x50] sm:$0xff]  ;;  %v854_v16 = vld [vmem:[%s3362_s29 + $0x58] sm:$0xff]  ;;  %v1073_v18 = vld [vmem:[%s3363_s7] sm:$0xff] }
  0x29   : > { %2323 = vmatprep.subr.bf16.mxu0 %v2322_v13  ;;  %696 = vrot.lane.b32.xlu1 %v682_v24, %s3339_s30  ;;  %v685_v28 = vmul.f32 %v2826_v22, %v683_v25  ;;  %v677_v38 = vmul.f32 %v2815_v12, %v676_v26  ;;  %v2346_v7 = vpack.c.bf16 %v848_v5, %v847_v4  ;;  %v1074_v19 = vld [vmem:[%s3363_s7 + $0x8] sm:$0xff]  ;;  %v1945_v21 = vld [vmem:[%s3364_s22] ss:$0 sm:$0xff]  ;;  %v1079_v5 = vld [vmem:[%s3363_s7 + $0x30] sm:$0xff]  ;;  %s1981_s22 = sshll.u32 %s2761_s3, 8 }
  0x2a   : > { %690 = vrot.lane.b32.xlu0 %v656_v17, %s3337_s28  ;;  %2341 = vmatpush3.bf16.msra.mxu1 %v2338_v1  ;;  %v2350_v10 = vpack.c.bf16 %v850_v9, %v849_v8  ;;  %v2358_v17 = vpack.c.bf16 %v854_v16, %v853_v15  ;;  %v2386_v20 = vpack.c.bf16 %v1074_v19, %v1073_v18  ;;  %v1077_v2 = vld [vmem:[%s3363_s7 + $0x20] sm:$0xff]  ;;  %s647_s28 = sand.u32 1, %s2614_s25   ;;  %s3264_s24 = scalar_lea.hbm %s3328_s21, %s1981_s22 }
  0x2b   : > { %v945_v35 = vld [vmem:[%s3361_s0] sm:$0xff]  ;;  %v946_v36 = vld [vmem:[%s3361_s0 + $0x8] sm:$0xff]  ;;  %v947_v44 = vld [vmem:[%s3361_s0 + $0x10] sm:$0xff]  ;;  %2343 = vmatprep.subr.bf16.mxu1 %v2342_v3 }
  0x2c   : > { %2325 = vmatpush3.bf16.msra.mxu0 %v2322_v13  ;;  %v2362_v37 = vpack.c.bf16 %v946_v36, %v945_v35  ;;  %v948_v45 = vld [vmem:[%s3361_s0 + $0x18] sm:$0xff]  ;;  %v949_v50 = vld [vmem:[%s3361_s0 + $0x20] sm:$0xff]  ;;  %v950_v51 = vld [vmem:[%s3361_s0 + $0x28] sm:$0xff] }
  0x2d   : > { %2327 = vmatprep.subr.bf16.mxu0 %v2326_v23  ;;  %698 = vrot.lane.b32.xlu1 %v685_v28, %s3339_s30  ;;  %v2366_v48 = vpack.c.bf16 %v948_v45, %v947_v44  ;;  %v2370_v52 = vpack.c.bf16 %v950_v51, %v949_v50  ;;  %v951_v53 = vld [vmem:[%s3361_s0 + $0x30] sm:$0xff]  ;;  %v952_v54 = vld [vmem:[%s3361_s0 + $0x38] sm:$0xff]  ;;  %v953_v56 = vld [vmem:[%s3361_s0 + $0x40] sm:$0xff]  ;;  %s3366_s30 = smov 64  }
  0x2e   : > { %v2374_v55 = vpack.c.bf16 %v952_v54, %v951_v53  ;;  %v954_v57 = vld [vmem:[%s3361_s0 + $0x48] sm:$0xff]  ;;  %v955_v59 = vld [vmem:[%s3361_s0 + $0x50] sm:$0xff]  ;;  %v956_v60 = vld [vmem:[%s3361_s0 + $0x58] sm:$0xff]  ;;  %2345 = vmatpush3.bf16.msra.mxu1 %v2342_v3 }
  0x2f   : > { %v2378_v58 = vpack.c.bf16 %v954_v57, %v953_v56  ;;  %v2382_v61 = vpack.c.bf16 %v956_v60, %v955_v59  ;;  %2347 = vmatprep.subr.bf16.mxu1 %v2346_v7  ;;  %v852_v13 = vld [vmem:[%s3362_s29 + $0x48] sm:$0xff]  ;;  %v1075_v57 = vld [vmem:[%s3363_s7 + $0x10] sm:$0xff]  ;;  %v1081_v9 = vld [vmem:[%s3363_s7 + $0x40] sm:$0xff] }
  0x30   : > { %2329 = vmatpush3.bf16.msra.mxu0 %v2326_v23  ;;  %v2354_v14 = vpack.c.bf16 %v852_v13, %v851_v11  ;;  %v1078_v3 = vld [vmem:[%s3363_s7 + $0x28] sm:$0xff]  ;;  %v1083_v13 = vld [vmem:[%s3363_s7 + $0x50] sm:$0xff] }
  0x31   : > { %2331 = vmatprep.subr.bf16.mxu0 %v2330_v31  ;;  %v2394_v4 = vpack.c.bf16 %v1078_v3, %v1077_v2  ;;  %v1345_v3 = vld [vmem:[%s3318_s11 + $0x30] sm:$0xff] }
  0x32   : > { %2349 = vmatpush3.bf16.msra.mxu1 %v2346_v7  ;;  %v1080_v7 = vld [vmem:[%s3363_s7 + $0x38] sm:$0xff] }
  0x33   : > { %2351 = vmatprep.subr.bf16.mxu1 %v2350_v10  ;;  %v2398_v8 = vpack.c.bf16 %v1080_v7, %v1079_v5 }
  0x34   : > { %2333 = vmatpush3.bf16.msra.mxu0 %v2330_v31 }
  0x35   : > { %2335 = vmatprep.subr.bf16.mxu0 %v2334_v34 }
  0x36   : > { %2353 = vmatpush3.bf16.msra.mxu1 %v2350_v10  ;;  %v1082_v10 = vld [vmem:[%s3363_s7 + $0x48] sm:$0xff] }
  0x37   : > { %2355 = vmatprep.subr.bf16.mxu1 %v2354_v14  ;;  %v2402_v11 = vpack.c.bf16 %v1082_v10, %v1081_v9  ;;  %v1348_v9 = vld [vmem:[%s3318_s11 + $0x48] sm:$0xff] }
  0x38   : > { %2337 = vmatpush3.bf16.msra.mxu0 %v2334_v34 }
  0x39   : > { %2363 = vmatprep.subr.bf16.mxu0 %v2362_v37 }
  0x3a   : > { %2357 = vmatpush3.bf16.msra.mxu1 %v2354_v14  ;;  %v1084_v14 = vld [vmem:[%s3363_s7 + $0x58] sm:$0xff] }
  0x3b   : > { %2359 = vmatprep.subr.bf16.mxu1 %v2358_v17  ;;  %v2406_v15 = vpack.c.bf16 %v1084_v14, %v1083_v13  ;;  %v1350_v13 = vld [vmem:[%s3318_s11 + $0x58] sm:$0xff] }
  0x3e   : > { %2361 = vmatpush3.bf16.msra.mxu1 %v2358_v17 }
  0x3f   : > { %2387 = vmatprep.subr.bf16.mxu1 %v2386_v20 }
  0x98   : > { %v689_v39 = vpop.permute.xlu0 %688 }
  0x99   : > { %v703_v40 = vsel %vm702_vm4, %v677_v38, %v689_v39  ;;  %v1951_v38 = vld [vmem:[%s3367_s6] ss:$0 sm:$0xff]  ;;  %s3266_s6 = scalar_lea.sflag [#allocation3], %s647_s28 }
  0x9b   : > { %v697_v41 = vpop.permute.xlu1 %696 }
  0x9c   : > { %v706_v42 = vsel %vm705_vm5, %v703_v40, %v697_v41  ;;  %v691_v43 = vpop.permute.xlu0 %690 }
  0x9d   : > { %2120 = vmatprep.mubr.msk.f32.mxu0 %vm727_vm6, %v706_v42  ;;  %v704_v46 = vsel %vm702_vm4, %v675_v27, %v691_v43 }
  0x9f   : > { %v699_v47 = vpop.permute.xlu1 %698 }
  0xa0   : > { %v707_v49 = vsel %vm705_vm5, %v704_v46, %v699_v47 }
  0xa1   : > { %2121 = vmatmul.mubr.msk.f32.vlgmr.msra.gmra.mrb[0].mxu0 %vm727_vm6, %v707_v49 }
  0xa2   : > { %2365 = vmatpush3.bf16.msra.mxu0 %v2362_v37  ;;  %2174 = vmatprep.mubr.msk.f32.mxu0 %vm727_vm6, %v706_v42 }
  0xa3   : > { %2367 = vmatprep.subr.bf16.mxu0 %v2366_v48 }
  0xa6   : > { %2369 = vmatpush3.bf16.msra.mxu0 %v2366_v48 }
  0xa7   : > { %2371 = vmatprep.subr.bf16.mxu0 %v2370_v52 }
  0xaa   : > { %2373 = vmatpush3.bf16.msra.mxu0 %v2370_v52 }
  0xab   : > { %2375 = vmatprep.subr.bf16.mxu0 %v2374_v55 }
  0xae   : > { %2377 = vmatpush3.bf16.msra.mxu0 %v2374_v55 }
  0xaf   : > { %2379 = vmatprep.subr.bf16.mxu0 %v2378_v58 }
  0xb2   : > { %2381 = vmatpush3.bf16.msra.mxu0 %v2378_v58  ;;  %v1076_v58 = vld [vmem:[%s3363_s7 + $0x18] sm:$0xff]  ;;  %s1940_s7 = sshll.u32 %s647_s28, 4 }
  0xb3   : > { %2383 = vmatprep.subr.bf16.mxu0 %v2382_v61  ;;  %v2390_v0 = vpack.c.bf16 %v1076_v58, %v1075_v57  ;;  %s649_s23 = scalar_lea.vmem [#allocation2], %s1940_s7  ;;  %s2627_s7 = smov [#allocation2]  }
  0xb4   : > { %s1874_s1 = sshll.u32 %s649_s23, 4  ;;  %s3259_s1 = int_to_ptr.vmem [resolvable:$true] %s1874_s1 }
  0xb5   : > { %s2560_s3 = scalar_lea.vmem %s3259_s1, 256 }
  0xb6   : > { %2385 = vmatpush3.bf16.msra.mxu0 %v2382_v61  ;;  %p2561_p11 = scmp.ne.s32.totalorder %s3259_s1, %s2560_s3 }
  0xb8   : > { %p2562_p12 = pnand %p2561_p11, %p2778_p5 }
  0xb9   : > { %2175 = vmatmul.mubr.msk.f32.vlgmr.msra.gmra.mrb[2].mxu0 %vm727_vm6, %v707_v49 }
  0xba   : > { %p2563_p13 = pneg %p2562_p12 }
 0x174   : > { %v2122_v23 = vpop.f32.mrb[0].mxu0 }
 0x175   : > { %v806_v24 = vadd.f32 %v2122_v23, %v1945_v21  ;;  %v800_v25 = vpop.f32.mrb[1].mxu0 }
 0x176   : > { %v801_v26 = vadd.f32 %v1945_v21, %v800_v25 }
 0x177   : > { %v810_v27 = vmax.f32 %v806_v24, 0.0 }
 0x178   : > { %v809_v28 = vmax.f32 %v801_v26, 0.0  ;;  %v1207_v26 = vld [vmem:[%s3368_s9] sm:$0xff] }
 0x179   : > { %v812_v29 = vrot.slane %v810_v27, 7  ;;  %v818_v30 = vrot.slane %v810_v27, 1  ;;  %827 = vrot.lane.b32.xlu1 %v810_v27, %s3365_s26  ;;  %v1208_v27 = vld [vmem:[%s3368_s9 + $0x8] sm:$0xff] }
 0x17a   : > { %v811_v31 = vrot.slane %v809_v28, 7  ;;  %v817_v32 = vrot.slane %v809_v28, 1  ;;  %825 = vrot.lane.b32.xlu0 %v809_v28, %s3365_s26  ;;  %v1209_v28 = vld [vmem:[%s3368_s9 + $0x10] sm:$0xff] }
 0x17c   : > { %v819_v33 = vsel %vm681_vm1, %v817_v32, %v818_v30  ;;  %v820_v34 = vsel %vm681_vm1, %v818_v30, %v817_v32  ;;  %v813_v35 = vsel %vm674_vm3, %v811_v31, %v812_v29  ;;  %v814_v36 = vsel %vm674_vm3, %v812_v29, %v811_v31  ;;  %v1210_v30 = vld [vmem:[%s3368_s9 + $0x18] sm:$0xff]  ;;  %v1211_v32 = vld [vmem:[%s3368_s9 + $0x20] sm:$0xff] }
 0x17d   : > { %v822_v37 = vmul.f32 %v2826_v22, %v820_v34  ;;  %v815_v56 = vmul.f32 %v2815_v12, %v814_v36  ;;  %v2410_v29 = vpack.c.bf16 %v1208_v27, %v1207_v26  ;;  %v2414_v31 = vpack.c.bf16 %v1210_v30, %v1209_v28  ;;  %v1214_v36 = vld [vmem:[%s3368_s9 + $0x38] sm:$0xff] }
 0x17e   : > { %833 = vrot.lane.b32.xlu0 %v819_v33, %s3366_s30  ;;  %v1212_v33 = vld [vmem:[%s3368_s9 + $0x28] sm:$0xff] }
 0x17f   : > { %835 = vrot.lane.b32.xlu1 %v822_v37, %s3366_s30  ;;  %2411 = vmatprep.subr.bf16.mxu0 %v2410_v29  ;;  %v2418_v34 = vpack.c.bf16 %v1212_v33, %v1211_v32 }
 0x180   : > { %2413 = vmatpush3.bf16.msra.mxu0 %v2410_v29 }
 0x181   : > { %2415 = vmatprep.subr.bf16.mxu0 %v2414_v31 }
 0x184   : > { %2417 = vmatpush3.bf16.msra.mxu0 %v2414_v31 }
 0x185   : > { %2419 = vmatprep.subr.bf16.mxu0 %v2418_v34 }
 0x188   : > { %2421 = vmatpush3.bf16.msra.mxu0 %v2418_v34  ;;  %v1458_v34 = vld [vmem:[%s3322_s15 + $0x10] sm:$0xff] }
 0x18c   : > { %v2176_v39 = vpop.f32.mrb[2].mxu0 }
 0x18d   : > { %v1036_v40 = vadd.f32 %v2176_v39, %v1951_v38  ;;  %v1030_v41 = vpop.f32.mrb[3].mxu0  ;;  %v1216_v39 = vld [vmem:[%s3368_s9 + $0x48] sm:$0xff] }
 0x18e   : > { %v1031_v42 = vadd.f32 %v1951_v38, %v1030_v41  ;;  %v1215_v38 = vld [vmem:[%s3368_s9 + $0x40] sm:$0xff]  ;;  %v1217_v41 = vld [vmem:[%s3368_s9 + $0x50] sm:$0xff] }
 0x18f   : > { %v1040_v43 = vmax.f32 %v1036_v40, 0.0  ;;  %v2426_v40 = vpack.c.bf16 %v1216_v39, %v1215_v38 }
 0x190   : > { %v1039_v44 = vmax.f32 %v1031_v42, 0.0  ;;  %v1218_v42 = vld [vmem:[%s3368_s9 + $0x58] sm:$0xff] }
 0x191   : > { %v1042_v45 = vrot.slane %v1040_v43, 7  ;;  %v1048_v46 = vrot.slane %v1040_v43, 1  ;;  %1057 = vrot.lane.b32.xlu1 %v1040_v43, %s3365_s26  ;;  %v2430_v43 = vpack.c.bf16 %v1218_v42, %v1217_v41 }
 0x192   : > { %v1041_v47 = vrot.slane %v1039_v44, 7  ;;  %v1047_v48 = vrot.slane %v1039_v44, 1  ;;  %1055 = vrot.lane.b32.xlu0 %v1039_v44, %s3365_s26  ;;  %v1339_v44 = vld [vmem:[%s3318_s11] sm:$0xff] }
 0x194   : > { %v1049_v49 = vsel %vm681_vm1, %v1047_v48, %v1048_v46  ;;  %v1050_v50 = vsel %vm681_vm1, %v1048_v46, %v1047_v48  ;;  %v1043_v51 = vsel %vm674_vm3, %v1041_v47, %v1042_v45  ;;  %v1044_v52 = vsel %vm674_vm3, %v1042_v45, %v1041_v47  ;;  %v1340_v45 = vld [vmem:[%s3318_s11 + $0x8] sm:$0xff]  ;;  %v1456_v46 = vld [vmem:[%s3322_s15] sm:$0xff] }
 0x195   : > { %v1052_v53 = vmul.f32 %v2826_v22, %v1050_v50  ;;  %v1045_v18 = vmul.f32 %v2815_v12, %v1044_v52  ;;  %v2434_v47 = vpack.c.bf16 %v1340_v45, %v1339_v44  ;;  %v1457_v48 = vld [vmem:[%s3322_s15 + $0x8] sm:$0xff]  ;;  %v1341_v52 = vld [vmem:[%s3318_s11 + $0x10] sm:$0xff]  ;;  %v1452_v44 = vld [vmem:[%s3321_s14] sm:$0xff] }
 0x196   : > { %1063 = vrot.lane.b32.xlu0 %v1049_v49, %s3366_s30  ;;  %v3066_v50 = vpack.c.bf16 %v1457_v48, %v1456_v46  ;;  %v1453_v45 = vld [vmem:[%s3321_s14 + $0x8] sm:$0xff]  ;;  %v1455_v48 = vld [vmem:[%s3321_s14 + $0x18] sm:$0xff] }
 0x197   : > { %1065 = vrot.lane.b32.xlu1 %v1052_v53, %s3366_s30  ;;  %v1342_v53 = vld [vmem:[%s3318_s11 + $0x18] sm:$0xff]  ;;  %v2466_v46 = vpack.c.bf16 %v1453_v45, %v1452_v44 }
 0x1eb   : > { %v828_v55 = vpop.permute.xlu1 %827 }
 0x1ec   : > { %v826_v54 = vpop.permute.xlu0 %825  ;;  %v840_v61 = vsel %vm702_vm4, %v813_v35, %v828_v55  ;;  %v1213_v35 = vld [vmem:[%s3368_s9 + $0x30] sm:$0xff]  ;;  %s3369_s9 = sld [smem:[#allocation14_spill]] }
 0x1ed   : > { %v839_v59 = vsel %vm702_vm4, %v815_v56, %v826_v54  ;;  %v2422_v37 = vpack.c.bf16 %v1214_v36, %v1213_v35  ;;  %v2438_v56 = vpack.c.bf16 %v1342_v53, %v1341_v52  ;;  %v1459_v35 = vld [vmem:[%s3322_s15 + $0x18] sm:$0xff] }
 0x1ee   : > { %v2462_v42 = vpack.c.bf16 %v1459_v35, %v1458_v34 }
 0x1ef   : > { %2423 = vmatprep.subr.bf16.mxu0 %v2422_v37 }
 0x1f0   : > { %v834_v60 = vpop.permute.xlu0 %833  ;;  %2425 = vmatpush3.bf16.msra.mxu0 %v2422_v37 }
 0x1f1   : > { %v836_v62 = vpop.permute.xlu1 %835  ;;  %v841_v63 = vsel %vm705_vm5, %v839_v59, %v834_v60  ;;  %2427 = vmatprep.subr.bf16.mxu0 %v2426_v40  ;;  %v1343_v60 = vld [vmem:[%s3318_s11 + $0x20] sm:$0xff] }
 0x1f2   : > { %v842_v1 = vsel %vm705_vm5, %v840_v61, %v836_v62  ;;  %2147 = vmatprep.mubr.msk.f32.mxu1 %vm727_vm6, %v841_v63  ;;  %v1948_v49 = vld [vmem:[%s3369_s9] ss:$0 sm:$0xff]  ;;  %v1344_v61 = vld [vmem:[%s3318_s11 + $0x28] sm:$0xff]  ;;  %s2564_s9 = sshll.u32 %s2627_s7, 4  ;;  %s2565_s9 = int_to_ptr.vmem [resolvable:$false] %s2564_s9 }
 0x1f3   : > { %2148 = vmatmul.mubr.msk.f32.vlgmr.msra.gmra.mrb[0].mxu1 %vm727_vm6, %v842_v1  ;;  %v2442_v63 = vpack.c.bf16 %v1344_v61, %v1343_v60  ;;  %p2567_p0 = scmp.lt.s32.totalorder %s3259_s1, %s2565_s9 }
 0x1f4   : > { %2389 = vmatpush3.bf16.msra.mxu1 %v2386_v20  ;;  %2429 = vmatpush3.bf16.msra.mxu0 %v2426_v40 }
 0x1f5   : > { %2391 = vmatprep.subr.bf16.mxu1 %v2390_v0  ;;  %2431 = vmatprep.subr.bf16.mxu0 %v2430_v43 }
 0x1f8   : > { %2393 = vmatpush3.bf16.msra.mxu1 %v2390_v0  ;;  %2433 = vmatpush3.bf16.msra.mxu0 %v2430_v43 }
 0x1f9   : > { %2395 = vmatprep.subr.bf16.mxu1 %v2394_v4  ;;  %2459 = vmatprep.subr.bf16.mxu0 %v3066_v50 }
 0x1fc   : > { %2397 = vmatpush3.bf16.msra.mxu1 %v2394_v4  ;;  %v1346_v4 = vld [vmem:[%s3318_s11 + $0x38] sm:$0xff] }
 0x1fd   : > { %2399 = vmatprep.subr.bf16.mxu1 %v2398_v8  ;;  %v2446_v7 = vpack.c.bf16 %v1346_v4, %v1345_v3  ;;  %v1664_v3 = vld [vmem:[%s3324_s17 + $0x18] sm:$0xff] }
 0x200   : > { %2401 = vmatpush3.bf16.msra.mxu1 %v2398_v8  ;;  %v1347_v8 = vld [vmem:[%s3318_s11 + $0x40] sm:$0xff] }
 0x201   : > { %2403 = vmatprep.subr.bf16.mxu1 %v2402_v11  ;;  %v2450_v10 = vpack.c.bf16 %v1348_v9, %v1347_v8  ;;  %v1667_v9 = vld [vmem:[%s3324_s17 + $0x30] sm:$0xff] }
 0x203   : > { %v1058_v17 = vpop.permute.xlu1 %1057 }
 0x204   : > { %v1056_v16 = vpop.permute.xlu0 %1055  ;;  %2405 = vmatpush3.bf16.msra.mxu1 %v2402_v11  ;;  %v1070_v21 = vsel %vm702_vm4, %v1043_v51, %v1058_v17  ;;  %v1349_v11 = vld [vmem:[%s3318_s11 + $0x50] sm:$0xff] }
 0x205   : > { %2407 = vmatprep.subr.bf16.mxu1 %v2406_v15  ;;  %v1069_v19 = vsel %vm702_vm4, %v1045_v18, %v1056_v16  ;;  %v2454_v14 = vpack.c.bf16 %v1350_v13, %v1349_v11  ;;  %v1669_v13 = vld [vmem:[%s3324_s17 + $0x40] sm:$0xff] }
 0x208   : > { %v1064_v20 = vpop.permute.xlu0 %1063  ;;  %2409 = vmatpush3.bf16.msra.mxu1 %v2406_v15  ;;  %v1954_v15 = vld [vmem:[%s3315_s8] ss:$0 sm:$0xff] }
 0x209   : > { %v1071_v23 = vsel %vm705_vm5, %v1069_v19, %v1064_v20  ;;  %v1066_v24 = vpop.permute.xlu1 %1065  ;;  %2435 = vmatprep.subr.bf16.mxu1 %v2434_v47 }
 0x20a   : > { %v1072_v25 = vsel %vm705_vm5, %v1070_v21, %v1066_v24  ;;  %2201 = vmatprep.mubr.msk.f32.mxu1 %vm727_vm6, %v1071_v23 }
 0x20b   : > { %2202 = vmatmul.mubr.msk.f32.vlgmr.msra.gmra.mrb[2].mxu1 %vm727_vm6, %v1072_v25 }
 0x20c   : > { %2437 = vmatpush3.bf16.msra.mxu1 %v2434_v47  ;;  %v1454_v47 = vld [vmem:[%s3321_s14 + $0x10] sm:$0xff] }
 0x20d   : > { %2439 = vmatprep.subr.bf16.mxu1 %v2438_v56 }
 0x210   : > { %2441 = vmatpush3.bf16.msra.mxu1 %v2438_v56 }
 0x211   : > { %2443 = vmatprep.subr.bf16.mxu1 %v2442_v63 }
 0x214   : > { %2445 = vmatpush3.bf16.msra.mxu1 %v2442_v63  ;;  %v1661_v63 = vld [vmem:[%s3324_s17] sm:$0xff] }
 0x215   : > { %2447 = vmatprep.subr.bf16.mxu1 %v2446_v7 }
 0x218   : > { %2449 = vmatpush3.bf16.msra.mxu1 %v2446_v7  ;;  %v1666_v7 = vld [vmem:[%s3324_s17 + $0x28] sm:$0xff] }
 0x219   : > { %2451 = vmatprep.subr.bf16.mxu1 %v2450_v10 }
 0x21c   : > { %2453 = vmatpush3.bf16.msra.mxu1 %v2450_v10  ;;  %v1668_v10 = vld [vmem:[%s3324_s17 + $0x38] sm:$0xff] }
 0x21d   : > { %2455 = vmatprep.subr.bf16.mxu1 %v2454_v14  ;;  %v2486_v11 = vpack.c.bf16 %v1668_v10, %v1667_v9 }
 0x220   : > { %2457 = vmatpush3.bf16.msra.mxu1 %v2454_v14  ;;  %v1670_v14 = vld [vmem:[%s3324_s17 + $0x48] sm:$0xff] }
 0x2c6   : > { %v2149_v51 = vpop.f32.mrb[0].mxu1 }
 0x2c7   : > { %v940_v54 = vadd.f32 %v2149_v51, %v1948_v49  ;;  %v934_v55 = vpop.f32.mrb[1].mxu1 }
 0x2c8   : > { %v935_v57 = vadd.f32 %v1948_v49, %v934_v55  ;;  %v2470_v49 = vpack.c.bf16 %v1455_v48, %v1454_v47  ;;  %v1969_v47 = vld [vmem:[%s3325_s18] ss:$0 sm:$0xff] }
 0x2c9   : > { %v3075_v58 = vmax.f32 %v940_v54, 0.0 }
 0x2ca   : > { %v3077_v59 = vmax.f32 %v935_v57, 0.0 }
 0x2cb   : > { %1191 = vrot.lane.b32.xlu1 %v3075_v58, %s3365_s26  ;;  %v1182_v62 = vrot.slane %v3075_v58, 1  ;;  %v1176_v29 = vrot.slane %v3075_v58, 7 }
 0x2cc   : > { %1189 = vrot.lane.b32.xlu0 %v3077_v59, %s3365_s26  ;;  %v1181_v0 = vrot.slane %v3077_v59, 1  ;;  %v1175_v28 = vrot.slane %v3077_v59, 7 }
 0x2ce   : > { %v1183_v1 = vsel %vm681_vm1, %v1181_v0, %v1182_v62  ;;  %v1184_v2 = vsel %vm681_vm1, %v1182_v62, %v1181_v0  ;;  %v1178_v30 = vsel %vm674_vm3, %v1176_v29, %v1175_v28  ;;  %v1177_v36 = vsel %vm674_vm3, %v1175_v28, %v1176_v29  ;;  %v1662_v0 = vld [vmem:[%s3324_s17 + $0x8] sm:$0xff] }
 0x2cf   : > { %v1186_v5 = vmul.f32 %v2826_v22, %v1184_v2  ;;  %v1179_v33 = vmul.f32 %v2815_v12, %v1178_v30  ;;  %v2474_v2 = vpack.c.bf16 %v1662_v0, %v1661_v63  ;;  %v1957_v63 = vld [vmem:[%s3317_s10] ss:$0 sm:$0xff] }
 0x2d0   : > { %1197 = vrot.lane.b32.xlu0 %v1183_v1, %s3366_s30  ;;  %v1663_v1 = vld [vmem:[%s3324_s17 + $0x10] sm:$0xff] }
 0x2d1   : > { %1199 = vrot.lane.b32.xlu1 %v1186_v5, %s3366_s30  ;;  %v2478_v4 = vpack.c.bf16 %v1664_v3, %v1663_v1  ;;  %v1665_v5 = vld [vmem:[%s3324_s17 + $0x20] sm:$0xff]  ;;  %2475 = vmatprep.subr.bf16.mxu1 %v2474_v2 }
 0x2d2   : > { %v2482_v8 = vpack.c.bf16 %v1666_v7, %v1665_v5  ;;  %v1972_v3 = vld [vmem:[%s3327_s20] ss:$0 sm:$0xff] }
 0x2de   : > { %v2203_v16 = vpop.f32.mrb[2].mxu1 }
 0x2df   : > { %v1170_v17 = vadd.f32 %v2203_v16, %v1954_v15  ;;  %v1164_v18 = vpop.f32.mrb[3].mxu1  ;;  %v1671_v16 = vld [vmem:[%s3324_s17 + $0x50] sm:$0xff] }
 0x2e0   : > { %v1165_v19 = vadd.f32 %v1954_v15, %v1164_v18  ;;  %v2490_v15 = vpack.c.bf16 %v1670_v14, %v1669_v13 }
 0x2e1   : > { %v1174_v20 = vmax.f32 %v1170_v17, 0.0  ;;  %v1672_v17 = vld [vmem:[%s3324_s17 + $0x58] sm:$0xff] }
 0x2e2   : > { %v1173_v21 = vmax.f32 %v1165_v19, 0.0  ;;  %v2494_v18 = vpack.c.bf16 %v1672_v17, %v1671_v16  ;;  %v1968_v19 = vld [vmem:[%s3323_s16] ss:$0 sm:$0xff] }
 0x2e3   : > { %1323 = vrot.lane.b32.xlu1 %v1174_v20, %s3365_s26  ;;  %v1314_v23 = vrot.slane %v1174_v20, 1  ;;  %v1308_v51 = vrot.slane %v1174_v20, 7 }
 0x2e4   : > { %1321 = vrot.lane.b32.xlu0 %v1173_v21, %s3365_s26  ;;  %v1313_v24 = vrot.slane %v1173_v21, 1 }
 0x2e6   : > { %v1315_v25 = vsel %vm681_vm1, %v1313_v24, %v1314_v23  ;;  %v1316_v26 = vsel %vm681_vm1, %v1314_v23, %v1313_v24 }
 0x2e7   : > { %v1318_v27 = vmul.f32 %v2826_v22, %v1316_v26 }
 0x2e8   : > { %1329 = vrot.lane.b32.xlu0 %v1315_v25, %s3366_s30 }
 0x2e9   : > { %1331 = vrot.lane.b32.xlu1 %v1318_v27, %s3366_s30 }
 0x33d   : > { %v1192_v32 = vpop.permute.xlu1 %1191 }
 0x33e   : > { %v1190_v31 = vpop.permute.xlu0 %1189  ;;  %v1204_v39 = vsel %vm702_vm4, %v1177_v36, %v1192_v32 }
 0x33f   : > { %v1203_v37 = vsel %vm702_vm4, %v1179_v33, %v1190_v31 }
 0x342   : > { %v1198_v38 = vpop.permute.xlu0 %1197 }
 0x343   : > { %v1205_v40 = vsel %vm705_vm5, %v1203_v37, %v1198_v38  ;;  %v1200_v41 = vpop.permute.xlu1 %1199 }
 0x344   : > { %v1206_v43 = vsel %vm705_vm5, %v1204_v39, %v1200_v41  ;;  %2228 = vmatprep.mubr.msk.f32.mxu0 %vm727_vm6, %v1205_v40 }
 0x345   : > { %2229 = vmatmul.mubr.msk.f32.vlgmr.msra.gmra.mrb[4].mxu0 %vm727_vm6, %v1206_v43 }
 0x346   : > { %2461 = vmatpush3.bf16.msra.mxu0 %v3066_v50  ;;  %2266 = vmatprep.mubr.msk.f32.mxu0 %vm702_vm4, %v1173_v21  ;;  %v1307_v50 = vrot.slane %v1173_v21, 7 }
 0x347   : > { %2463 = vmatprep.subr.bf16.mxu0 %v2462_v42 }
 0x348   : > { %v1310_v52 = vsel %vm674_vm3, %v1308_v51, %v1307_v50  ;;  %v1309_v56 = vsel %vm674_vm3, %v1307_v50, %v1308_v51 }
 0x349   : > { %v1311_v55 = vmul.f32 %v2815_v12, %v1310_v52 }
 0x34a   : > { %2465 = vmatpush3.bf16.msra.mxu0 %v2462_v42 }
 0x34b   : > { %2467 = vmatprep.subr.bf16.mxu0 %v2466_v46 }
 0x34d   : > { %2267 = vmatmul.mubr.msk.f32.vlgmr.msra.gmra.mrb[6].mxu0 %vm702_vm4, %v1174_v20 }
 0x34e   : > { %2469 = vmatpush3.bf16.msra.mxu0 %v2466_v46  ;;  %2277 = vmatprep.mubr.msk.f32.mxu0 %vm702_vm4, %v3077_v59 }
 0x34f   : > { %2471 = vmatprep.subr.bf16.mxu0 %v2470_v49 }
 0x352   : > { %2473 = vmatpush3.bf16.msra.mxu0 %v2470_v49 }
 0x355   : > { %2278 = vmatmul.mubr.msk.f32.vlgmr.msra.gmra.mrb[6].mxu0 %vm702_vm4, %v3075_v58  ;;  %v1324_v54 = vpop.permute.xlu1 %1323 }
 0x356   : > { %v1322_v53 = vpop.permute.xlu0 %1321  ;;  %v1336_v60 = vsel %vm702_vm4, %v1309_v56, %v1324_v54  ;;  %v1960_v54 = vld [vmem:[%s3319_s12] ss:$0 sm:$0xff] }
 0x357   : > { %v1335_v57 = vsel %vm702_vm4, %v1311_v55, %v1322_v53 }
 0x35a   : > { %v1330_v59 = vpop.permute.xlu0 %1329 }
 0x35b   : > { %v1337_v61 = vsel %vm705_vm5, %v1335_v57, %v1330_v59  ;;  %v1332_v62 = vpop.permute.xlu1 %1331 }
 0x35c   : > { %v1338_v58 = vsel %vm705_vm5, %v1336_v60, %v1332_v62  ;;  %2255 = vmatprep.mubr.msk.f32.mxu1 %vm727_vm6, %v1337_v61  ;;  %v1963_v61 = vld [vmem:[%s3320_s13] ss:$0 sm:$0xff] }
 0x35d   : > { %2256 = vmatmul.mubr.msk.f32.vlgmr.msra.gmra.mrb[4].mxu1 %vm727_vm6, %v1338_v58 }
 0x35e   : > { %2477 = vmatpush3.bf16.msra.mxu1 %v2474_v2 }
 0x35f   : > { %2479 = vmatprep.subr.bf16.mxu1 %v2478_v4 }
 0x362   : > { %2481 = vmatpush3.bf16.msra.mxu1 %v2478_v4 }
 0x363   : > { %2483 = vmatprep.subr.bf16.mxu1 %v2482_v8 }
 0x366   : > { %2485 = vmatpush3.bf16.msra.mxu1 %v2482_v8 }
 0x367   : > { %2487 = vmatprep.subr.bf16.mxu1 %v2486_v11 }
 0x36a   : > { %2489 = vmatpush3.bf16.msra.mxu1 %v2486_v11 }
 0x36b   : > { %2491 = vmatprep.subr.bf16.mxu1 %v2490_v15 }
 0x36e   : > { %2493 = vmatpush3.bf16.msra.mxu1 %v2490_v15 }
 0x36f   : > { %2495 = vmatprep.subr.bf16.mxu1 %v2494_v18 }
 0x372   : > { %2497 = vmatpush3.bf16.msra.mxu1 %v2494_v18 }
 0x428   : > { %v2279_v20 = vpop.f32.mrb[6].mxu0 }
 0x429   : > { %v1626_v21 = vadd.f32 %v2279_v20, %v1968_v19  ;;  %v1609_v23 = vpop.f32.mrb[7].mxu0 }
 0x42a   : > { %v1625_v24 = vadd.f32 %v1968_v19, %v1609_v23 }
 0x42b   : > { %v1628_v25 = vmax.f32 %v1626_v21, 0.0 }
 0x42c   : > { %v1627_v26 = vmax.f32 %v1625_v24, 0.0 }
 0x42d   : > { %v1630_v27 = vrot.slane %v1628_v25, 7  ;;  %v1636_v28 = vrot.slane %v1628_v25, 1  ;;  %1645 = vrot.lane.b32.xlu1 %v1628_v25, %s3365_s26 }
 0x42e   : > { %v1629_v29 = vrot.slane %v1627_v26, 7  ;;  %v1635_v30 = vrot.slane %v1627_v26, 1  ;;  %1643 = vrot.lane.b32.xlu0 %v1627_v26, %s3365_s26  ;;  %s2566_s26 = scalar_lea.vmem %s2565_s9, 512 }
 0x42f   : > { %p2568_p1 = scmp.lt.s32.totalorder %s2566_s26, %s2560_s3 }
 0x430   : > { %v2257_v31 = vpop.f32.mrb[4].mxu1  ;;  %v1637_v32 = vsel %vm681_vm1, %v1635_v30, %v1636_v28  ;;  %v1638_v33 = vsel %vm681_vm1, %v1636_v28, %v1635_v30  ;;  %v1631_v34 = vsel %vm674_vm3, %v1629_v29, %v1630_v27  ;;  %v1632_v35 = vsel %vm674_vm3, %v1630_v27, %v1629_v29 }
 0x431   : > { %v1430_v36 = vpop.f32.mrb[5].mxu1  ;;  %v1640_v37 = vmul.f32 %v2826_v22, %v1638_v33  ;;  %v1633_v40 = vmul.f32 %v2815_v12, %v1632_v35  ;;  %v1763_v22 = vld [vmem:[%s3326_s19] sm:$0xff]  ;;  %v1764_v12 = vld [vmem:[%s3326_s19 + $0x8] sm:$0xff]  ;;  %v1436_v55 = vadd.f32 %v2257_v31, %v1960_v54  ;;  %p2569_p2 = por %p2568_p1, %p2567_p0 }
 0x432   : > { %1651 = vrot.lane.b32.xlu0 %v1637_v32, %s3366_s30  ;;  %v2498_v46 = vpack.c.bf16 %v1764_v12, %v1763_v22  ;;  %v1431_v56 = vadd.f32 %v1960_v54, %v1430_v36 }
 0x433   : > { %1653 = vrot.lane.b32.xlu1 %v1640_v37, %s3366_s30  ;;  %v1441_v57 = vmul.f32 1.442695, %v1436_v55  ;;  %p2570_p3 = pnand %p2569_p2, %p2563_p13 }
 0x434   : > { %2499 = vmatprep.subr.bf16.mxu0 %v2498_v46  ;;  %v1439_v59 = vmul.f32 1.442695, %v1431_v56 }
 0x435   : > { %2501 = vmatpush3.bf16.msra.mxu0 %v2498_v46  ;;  %2556 = vpow2.f32 %v1441_v57 }
 0x436   : > { %2558 = vpow2.f32 %v1439_v59 }
 0x43f   : > { %v2557_v60 = vpop.eup %2556 }
 0x440   : > { %v2559_v62 = vpop.eup %2558  ;;  %v1451_v58 = vmul.f32 %v2557_v60, %v1963_v61 }
 0x441   : > { %v1450_v0 = vmul.f32 %v2559_v62, %v1963_v61 }
 0x442   : > { %v2502_v1 = vadd.f32 %v1957_v63, %v1451_v58 }
 0x443   : > { %v2505_v4 = vadd.f32 %v1957_v63, %v1450_v0 }
 0x49f   : > { %v1646_v39 = vpop.permute.xlu1 %1645 }
 0x4a0   : > { %v1644_v38 = vpop.permute.xlu0 %1643  ;;  %v1658_v43 = vsel %vm702_vm4, %v1631_v34, %v1646_v39 }
 0x4a1   : > { %v1657_v41 = vsel %vm702_vm4, %v1633_v40, %v1644_v38 }
 0x4a4   : > { %v1652_v42 = vpop.permute.xlu0 %1651 }
 0x4a5   : > { %v1659_v44 = vsel %vm705_vm5, %v1657_v41, %v1652_v42  ;;  %v1654_v6 = vpop.permute.xlu1 %1653 }
 0x4a6   : > { %v1660_v45 = vsel %vm705_vm5, %v1658_v43, %v1654_v6  ;;  %2304 = vmatprep.mubr.msk.f32.mxu1 %vm727_vm6, %v1659_v44 }
 0x4a7   : > { %2305 = vmatmul.mubr.msk.f32.vlgmr.msra.gmra.mrb[6].mxu1 %vm727_vm6, %v1660_v45 }
 0x57a   : > { %v2306_v48 = vpop.f32.mrb[6].mxu1 }
 0x57b   : > { %v1758_v49 = vadd.f32 %v2306_v48, %v1969_v47  ;;  %v1752_v50 = vpop.f32.mrb[7].mxu1 }
 0x57c   : > { %v1753_v51 = vadd.f32 %v1969_v47, %v1752_v50 }
 0x57d   : > { %v1762_v53 = vmax.f32 %v1758_v49, 0.0 }
 0x57e   : > { %v1761_v52 = vmax.f32 %v1753_v51, 0.0 }
 0x580   : > { %2311 = vmatprep.mubr.msk.f32.mxu0 %vm1772_vm7, %v1761_v52 }
 0x581   : > { %2312 = vmatmul.mubr.msk.f32.vlgmr.msra.gmra.mrb[4].mxu0 %vm1772_vm7, %v1762_v53 }
 0x654   : > { %v2313_v2 = vpop.f32.mrb[4].mxu0 }
 0x655   : > { %v2503_v5 = vadd.f32 %v2502_v1, %v2313_v2  ;;  %v1845_v7 = vpop.f32.mrb[5].mxu0 }
 0x656   : > { %v2506_v8 = vadd.f32 %v2505_v4, %v1845_v7 }
 0x657   : > { %v2504_v9 = vadd.f32 %v2503_v5, %v1972_v3 }
 0x658   : > { %v2507_v10 = vadd.f32 %v2506_v8, %v1972_v3 }
 0x659   : > { %1859 = vst [vmem:[%s649_s23 + $0x8] sm:$0xff] %v2504_v9 }
 0x65a   : > { %1858 = vst [vmem:[%s649_s23] sm:$0xff] %v2507_v10 }
 0x65b   : > { %2573 = shalt.err (!%p2570_p3)
}
 0x65c   : > { %s2574_s28 = scalar_lea.hbm %s3264_s24, 256  ;;  %s2578_s23 = scalar_lea.hbm %s3328_s21, 512 }
 0x65d   : > { %p2575_p4 = scmp.ne.s32.totalorder %s3264_s24, %s2574_s28  ;;  %p2579_p9 = scmp.lt.u32.totalorder %s3264_s24, %s3328_s21 }
 0x65e   : > { %p2580_p10 = scmp.lt.u32.totalorder %s2578_s23, %s2574_s28  ;;  %p2582_p12 = scmp.lt.u32.totalorder %s2574_s28, %s3264_s24 }
 0x65f   : > { %p2576_p7 = pnand %p2575_p4, %p2778_p5 }
 0x660   : > { %p2581_p11 = por %p2580_p10, %p2579_p9 }
 0x661   : > { %p2577_p8 = pneg %p2576_p7 }
 0x662   : > { %p2583_p13 = por %p2582_p12, %p2581_p11 }
 0x664   : > { %p2584_p0 = pnand %p2583_p13, %p2577_p8 }
 0x666   : > { %2587 = shalt.err (!%p2584_p0)
}
 0x667   : > { %s2628_s2 = smov 128   ;;  %s2629_s3 = smov 8  }
 0x668   : > { %2512 = dma.vmem_to_hbm [thread:$0]  (%p2778_p5), %s3259_s1, 256, %s3264_s24, %s3266_s6, %s2628_s2, %s2628_s2, %s2629_s3  }
 0x669 PF: > { %s3370_s7 = sld [smem:[#allocation5_spill]]  ;;  %p2518_p1 = scmp.ge.s32.totalorder %s2622_s27, 2 }
 0x66b   : > { %p2515_p2 = pnand %p2518_p1, %p2782_p6 }
 0x66f   : > { %s1889_s26 = sand.u32 1, %s3370_s7  }
 0x670   : > { %s1890_s28 = scalar_lea.sflag [#allocation3], %s1889_s26 }
 0x671   : > { %2605 = dma.done.wait (!%p2515_p2), %s1890_s28, 256  }
 0x672   : > { %2607 = vsyncadd (!%p2515_p2), %s1890_s28, 4294967040  ;;  %s3372_s27 = sld [smem:[#allocation7_spill]]  ;;  %s3373_s30 = sld [smem:[#allocation6_spill]] }
 0x673   : > { %s3374_s26 = sld [smem:[#allocation8_spill]]  ;;  %s3375_s2 = smov %s2614_s25 }
 0x678   : > { %p31_p3 = scmp.ge.s32.totalorder %s3372_s27, 4   ;;  %s3376_s25 = smov %s3373_s30 }
 0x67a   :  { %33 = sbr.rel (!%p31_p3) target bundleno = 13 (0xd), region = 139 }
 0x681   :  { %1895 = vsyncpa [#allocation3], 1 }
 0x682   :  { %1897 = vsyncpa [#allocation3 + $0x1], 1 }

</bundles_post_ra>
